<compile_context>
chip_gen: v7x
topology: tpu7x:2x2x1
jax: 0.10.0
libtpu: 0.0.40
codegen_flags: <defaults>
</compile_context>

<pallas_src>
import functools
import math

import jax
import jax.numpy as jnp
from jax.experimental import pallas as pl
from jax.experimental.pallas import tpu as pltpu


# ----------------------------- kernel ----------------------------------------

def _layernorm(x, gamma, beta, eps=1e-5):
    mu = jnp.mean(x, axis=-1, keepdims=True)
    var = jnp.mean((x - mu) ** 2, axis=-1, keepdims=True)
    return (x - mu) * jax.lax.rsqrt(var + eps) * gamma + beta


def encoder_kernel(x_ref, bias_ref, wemb_ref, bemb_ref, pos_ref,
                   wqkv_ref, bqkv_ref, wo_ref, bo_ref,
                   g1_ref, be1_ref, w1_ref, b1_ref, w2_ref, b2_ref,
                   g2_ref, be2_ref, o_ref, act_ref, *, num_heads):
    l = pl.program_id(0)
    M, E = act_ref.shape                       # M = B * S (packed token slab)
    H = num_heads
    Dh = E // H

    # --- first layer iteration: embedding + positional encoding (dropout=id) --
    @pl.when(l == 0)
    def _():
        xv = x_ref[...].astype(jnp.bfloat16)                       # (M, V)
        emb = jnp.dot(xv, wemb_ref[...],
                      preferred_element_type=jnp.float32) + bemb_ref[...]
        act_ref[...] = emb + pos_ref[...]                           # (M, E)

    x = act_ref[...]                                                # (M, E) f32
    xb = x.astype(jnp.bfloat16)

    # ---- fused QKV projection: one lane-dense (M,E)@(E,3E) MXU matmul --------
    # 1/sqrt(Dh) is folded into the Q columns/bias at init.
    qkv = jnp.dot(xb, wqkv_ref[...],
                  preferred_element_type=jnp.float32) + bqkv_ref[...]   # (M,3E)
    qkv = qkv.astype(jnp.bfloat16)
    q, k, v = qkv[:, :E], qkv[:, E:2 * E], qkv[:, 2 * E:]

    # Head-batched attention over the whole packed token slab; cross-sequence
    # pairs and padded keys are removed by the precomputed additive bias.
    qh = jnp.stack([q[:, h * Dh:(h + 1) * Dh] for h in range(H)], axis=0)  # (H,M,Dh)
    kh = jnp.stack([k[:, h * Dh:(h + 1) * Dh] for h in range(H)], axis=0)
    vh = jnp.stack([v[:, h * Dh:(h + 1) * Dh] for h in range(H)], axis=0)

    scores = jnp.einsum('hqd,hkd->hqk', qh, kh,
                        preferred_element_type=jnp.float32)        # (H, M, M)
    scores = scores + bias_ref[...]                                # (1, M, M) bcast
    scores = scores - jnp.max(scores, axis=-1, keepdims=True)
    p = jnp.exp(scores)
    p = p * pl.reciprocal(jnp.sum(p, axis=-1, keepdims=True), approx=True)
    ctx = jnp.einsum('hqk,hkd->hqd', p.astype(jnp.bfloat16), vh,
                     preferred_element_type=jnp.float32)           # (H, M, Dh)

    # concat heads -> (M, E); single lane-dense output projection (no head sum)
    ctx2d = jnp.concatenate([ctx[h] for h in range(H)],
                            axis=-1).astype(jnp.bfloat16)          # (M, E)
    attn = jnp.dot(ctx2d, wo_ref[...],
                   preferred_element_type=jnp.float32) + bo_ref[...]

    x1 = _layernorm(attn + x, g1_ref[...], be1_ref[...])

    # -------------------------- feed-forward ----------------------------------
    h1 = jnp.dot(x1.astype(jnp.bfloat16), w1_ref[...],
                 preferred_element_type=jnp.float32) + b1_ref[...]
    h1 = jnp.maximum(h1, 0.0)
    ff = jnp.dot(h1.astype(jnp.bfloat16), w2_ref[...],
                 preferred_element_type=jnp.float32) + b2_ref[...]

    out = _layernorm(ff + x1, g2_ref[...], be2_ref[...])
    act_ref[...] = out

    @pl.when(l == pl.num_programs(0) - 1)
    def _():
        o_ref[...] = out.astype(o_ref.dtype)


# ----------------------------- wrapper ----------------------------------------

def encoder_forward(x, mask, params, num_heads):
    B, S, V = x.shape
    L, E, _E3 = params["wqkv"].shape
    F = params["w1"].shape[2]
    H = num_heads
    assert E % H == 0
    M = B * S

    # Pack the batch into the matmul M dimension (wrapper-side layout only).
    x2d = x.reshape(M, V)
    pos = jnp.tile(params["pos"][:S], (B, 1))                      # (M, E)

    # Additive attention bias over the packed slab:
    #   0      where query & key are in the same sequence and the key is kept,
    #   -1e20  otherwise (mirrors masked_fill(mask == 0, -1e20) and removes
    #          cross-sequence pairs introduced by the packing).
    seq_id = jnp.repeat(jnp.arange(B), S)                          # (M,)
    same = seq_id[:, None] == seq_id[None, :]
    key_keep = mask.reshape(M) > 0
    bias = jnp.where(same & key_keep[None, :], 0.0, -1e20)
    bias = bias.astype(jnp.float32).reshape(1, M, M)

    kernel = functools.partial(encoder_kernel, num_heads=H)

    const2 = lambda l: (0, 0)
    const3 = lambda l: (0, 0, 0)
    layer3 = lambda l: (l, 0, 0)

    in_specs = [
        pl.BlockSpec((M, V), const2),            # x (packed, resident)
        pl.BlockSpec((1, M, M), const3),         # additive mask bias (resident)
        pl.BlockSpec((V, E), const2),            # w_emb (bf16, resident)
        pl.BlockSpec((1, E), const2),            # b_emb
        pl.BlockSpec((M, E), const2),            # pos (tiled over batch)
        pl.BlockSpec((None, E, 3 * E), layer3),  # wqkv (bf16, per layer)
        pl.BlockSpec((None, 1, 3 * E), layer3),  # bqkv
        pl.BlockSpec((None, E, E), layer3),      # wo (bf16)
        pl.BlockSpec((None, 1, E), layer3),      # bo
        pl.BlockSpec((None, 1, E), layer3),      # ln1 gamma
        pl.BlockSpec((None, 1, E), layer3),      # ln1 beta
        pl.BlockSpec((None, E, F), layer3),      # w1 (bf16)
        pl.BlockSpec((None, 1, F), layer3),      # b1
        pl.BlockSpec((None, F, E), layer3),      # w2 (bf16)
        pl.BlockSpec((None, 1, E), layer3),      # b2
        pl.BlockSpec((None, 1, E), layer3),      # ln2 gamma
        pl.BlockSpec((None, 1, E), layer3),      # ln2 beta
    ]

    args = (x2d, bias, params["w_emb"], params["b_emb"], pos,
            params["wqkv"], params["bqkv"], params["wo"], params["bo"],
            params["g1"], params["be1"], params["w1"], params["b1"],
            params["w2"], params["b2"], params["g2"], params["be2"])

    out2d = pl.pallas_call(
        kernel,
        out_shape=jax.ShapeDtypeStruct((M, E), jnp.float32),
        grid_spec=pltpu.PrefetchScalarGridSpec(
            num_scalar_prefetch=0,
            grid=(L,),                           # layer loop only: weights are
            in_specs=in_specs,                   # fetched once per layer
            out_specs=pl.BlockSpec((M, E), const2),
            scratch_shapes=[pltpu.VMEM((M, E), jnp.float32)],   # residual stream
        ),
        compiler_params=pltpu.CompilerParams(
            dimension_semantics=("arbitrary",)),
    )(*args)

    return out2d.reshape(B, S, E)


# ------------------------- parameter construction ----------------------------

def sinusoidal_pe(max_length, embed_size):
    pos = jnp.arange(max_length, dtype=jnp.float32)[:, None]
    i = jnp.arange(embed_size // 2, dtype=jnp.float32)[None, :]
    angle = pos / jnp.power(10000.0, 2.0 * i / embed_size)
    pe = jnp.zeros((max_length, embed_size), jnp.float32)
    pe = pe.at[:, 0::2].set(jnp.sin(angle))
    pe = pe.at[:, 1::2].set(jnp.cos(angle))
    return pe


def init_params(key, vocab, embed, num_layers, num_heads, forward_expansion,
                max_length):
    Dh = embed // num_heads
    F = embed * forward_expansion
    scale = 1.0 / math.sqrt(Dh)

    def dense(k, fan_in, fan_out):
        kw, kb = jax.random.split(k)
        w = jax.random.normal(kw, (fan_in, fan_out), jnp.float32) * 0.02
        b = jax.random.normal(kb, (fan_out,), jnp.float32) * 0.02
        return w, b

    keys = jax.random.split(key, num_layers + 1)
    w_emb, b_emb = dense(keys[0], vocab, embed)

    names = ("wqkv", "bqkv", "wo", "bo", "g1", "be1",
             "w1", "b1", "w2", "b2", "g2", "be2")
    stacks = {n: [] for n in names}
    for li in range(num_layers):
        ks = jax.random.split(keys[li + 1], 6)
        wq_d, bq_d = dense(ks[0], embed, embed)
        wk_d, bk_d = dense(ks[1], embed, embed)
        wv_d, bv_d = dense(ks[2], embed, embed)
        wo_d, bo_d = dense(ks[3], embed, embed)
        w1_d, b1_d = dense(ks[4], embed, F)
        w2_d, b2_d = dense(ks[5], F, embed)
        # Fuse Q/K/V into one lane-dense (E, 3E) matrix; fold 1/sqrt(Dh) into Q.
        stacks["wqkv"].append(
            jnp.concatenate([wq_d * scale, wk_d, wv_d], axis=1))
        stacks["bqkv"].append(
            jnp.concatenate([bq_d * scale, bk_d, bv_d]).reshape(1, 3 * embed))
        stacks["wo"].append(wo_d)
        stacks["bo"].append(bo_d.reshape(1, embed))
        stacks["w1"].append(w1_d)
        stacks["b1"].append(b1_d.reshape(1, F))
        stacks["w2"].append(w2_d)
        stacks["b2"].append(b2_d.reshape(1, embed))
        stacks["g1"].append(jnp.ones((1, embed), jnp.float32))
        stacks["be1"].append(jnp.zeros((1, embed), jnp.float32))
        stacks["g2"].append(jnp.ones((1, embed), jnp.float32))
        stacks["be2"].append(jnp.zeros((1, embed), jnp.float32))

    params = {k: jnp.stack(v) for k, v in stacks.items()}
    for k in ("wqkv", "wo", "w1", "w2"):
        params[k] = params[k].astype(jnp.bfloat16)      # bf16 weights feed the MXU
    params["w_emb"] = w_emb.astype(jnp.bfloat16)
    params["b_emb"] = b_emb.reshape(1, embed)
    params["pos"] = sinusoidal_pe(max_length, embed)
    return params


# ----------------------------------- main -------------------------------------

if __name__ == "__main__":
    # small shapes consistent with the module; E chosen lane-dense (128)
    B, S, V = 2, 8, 16            # batch, seq_len, src_vocab_size
    E, H, L, FE = 128, 4, 2, 4    # embed_size, num_heads, num_layers, fwd_expansion
    MAX_LEN = S

    key = jax.random.PRNGKey(0)
    k_tok, k_param = jax.random.split(key)

    # deterministic "one-hot" vocab-vector inputs (what LinearModel consumes)
    tokens = jax.random.randint(k_tok, (B, S), 0, V)
    x = jax.nn.one_hot(tokens, V, dtype=jnp.float32)          # (B, S, V)

    # mask: 1 = keep key position, 0 = masked out (pad)
    mask = jnp.ones((B, 1, S), jnp.float32)
    mask = mask.at[1, 0, S - 2:].set(0.0)

    params = init_params(k_param, V, E, L, H, FE, MAX_LEN)

    out = encoder_forward(x, mask, params, num_heads=H)
    out = jax.block_until_ready(out)

    assert out.shape == (B, S, E)
    assert bool(jnp.all(jnp.isfinite(out)))
    print("KERNEL_OK")
</pallas_src>

<mosaic_0001>
module attributes {stable_mosaic.version = 11 : i64} {
  func.func @encoder_kernel(%arg0: i32, %arg1: memref<16x16xf32, #tpu.memory_space<vmem>>, %arg2: memref<1x16x16xf32, #tpu.memory_space<vmem>>, %arg3: memref<16x128xbf16, #tpu.memory_space<vmem>>, %arg4: memref<1x128xf32, #tpu.memory_space<vmem>>, %arg5: memref<16x128xf32, #tpu.memory_space<vmem>>, %arg6: memref<1x128x384xbf16, #tpu.memory_space<vmem>>, %arg7: memref<1x1x384xf32, #tpu.memory_space<vmem>>, %arg8: memref<1x128x128xbf16, #tpu.memory_space<vmem>>, %arg9: memref<1x1x128xf32, #tpu.memory_space<vmem>>, %arg10: memref<1x1x128xf32, #tpu.memory_space<vmem>>, %arg11: memref<1x1x128xf32, #tpu.memory_space<vmem>>, %arg12: memref<1x128x512xbf16, #tpu.memory_space<vmem>>, %arg13: memref<1x1x512xf32, #tpu.memory_space<vmem>>, %arg14: memref<1x512x128xbf16, #tpu.memory_space<vmem>>, %arg15: memref<1x1x128xf32, #tpu.memory_space<vmem>>, %arg16: memref<1x1x128xf32, #tpu.memory_space<vmem>>, %arg17: memref<1x1x128xf32, #tpu.memory_space<vmem>>, %arg18: memref<16x128xf32, #tpu.memory_space<vmem>>, %arg19: memref<16x128xf32, #tpu.memory_space<vmem>>) attributes {dimension_semantics = [#tpu.dimension_semantics<arbitrary>], iteration_bounds = array<i64: 2>, scalar_prefetch = 0 : i64, scratch_operands = 1 : i64, tpu.core_type = #tpu.core_type<tc>, window_params = [{pipeline_mode = #tpu.pipeline_mode<synchronous>, transform_indices = @transform_0, window_bounds = array<i64: 16, 16>}, {pipeline_mode = #tpu.pipeline_mode<synchronous>, transform_indices = @transform_1, window_bounds = array<i64: 1, 16, 16>}, {pipeline_mode = #tpu.pipeline_mode<synchronous>, transform_indices = @transform_2, window_bounds = array<i64: 16, 128>}, {pipeline_mode = #tpu.pipeline_mode<synchronous>, transform_indices = @transform_3, window_bounds = array<i64: 1, 128>}, {pipeline_mode = #tpu.pipeline_mode<synchronous>, transform_indices = @transform_4, window_bounds = array<i64: 16, 128>}, {transform_indices = @transform_5, window_bounds = array<i64: 1, 128, 384>}, {transform_indices = @transform_6, window_bounds = array<i64: 1, 1, 384>}, {transform_indices = @transform_7, window_bounds = array<i64: 1, 128, 128>}, {transform_indices = @transform_8, window_bounds = array<i64: 1, 1, 128>}, {transform_indices = @transform_9, window_bounds = array<i64: 1, 1, 128>}, {transform_indices = @transform_10, window_bounds = array<i64: 1, 1, 128>}, {transform_indices = @transform_11, window_bounds = array<i64: 1, 128, 512>}, {transform_indices = @transform_12, window_bounds = array<i64: 1, 1, 512>}, {transform_indices = @transform_13, window_bounds = array<i64: 1, 512, 128>}, {transform_indices = @transform_14, window_bounds = array<i64: 1, 1, 128>}, {transform_indices = @transform_15, window_bounds = array<i64: 1, 1, 128>}, {transform_indices = @transform_16, window_bounds = array<i64: 1, 1, 128>}, {pipeline_mode = #tpu.pipeline_mode<synchronous>, transform_indices = @transform_17, window_bounds = array<i64: 16, 128>}]} {
    %c0_i32 = arith.constant 0 : i32
    %0 = arith.cmpi eq, %arg0, %c0_i32 : i32
    %1 = arith.extui %0 : i1 to i32
    %c0_i32_0 = arith.constant 0 : i32
    %2 = arith.cmpi ne, %1, %c0_i32_0 : i32
    scf.if %2 {
      %c0_62 = arith.constant 0 : index
      %c0_63 = arith.constant 0 : index
      %152 = vector.load %arg1[%c0_62, %c0_63] : memref<16x16xf32, #tpu.memory_space<vmem>>, vector<16x16xf32>
      %153 = arith.truncf %152 : vector<16x16xf32> to vector<16x16xbf16>
      %c0_64 = arith.constant 0 : index
      %c0_65 = arith.constant 0 : index
      %154 = vector.load %arg3[%c0_64, %c0_65] : memref<16x128xbf16, #tpu.memory_space<vmem>>, vector<16x128xbf16>
      %cst_66 = arith.constant dense<0.000000e+00> : vector<16x128xf32>
      %155 = tpu.matmul %153, %154, %cst_66 {dimension_numbers = #tpu.dot_dimension_numbers<[1], [0], [0], [1], [0, 0, 1, 1], [], []>} : vector<16x16xbf16>, vector<16x128xbf16>, vector<16x128xf32> -> vector<16x128xf32>
      %c0_67 = arith.constant 0 : index
      %c0_68 = arith.constant 0 : index
      %156 = vector.load %arg4[%c0_67, %c0_68] : memref<1x128xf32, #tpu.memory_space<vmem>>, vector<1x128xf32>
      %157 = vector.broadcast %156 : vector<1x128xf32> to vector<16x128xf32>
      %158 = arith.addf %155, %157 : vector<16x128xf32>
      %c0_69 = arith.constant 0 : index
      %c0_70 = arith.constant 0 : index
      %159 = vector.load %arg5[%c0_69, %c0_70] : memref<16x128xf32, #tpu.memory_space<vmem>>, vector<16x128xf32>
      %160 = arith.addf %158, %159 : vector<16x128xf32>
      %c0_71 = arith.constant 0 : index
      %c0_72 = arith.constant 0 : index
      %161 = vector.load %arg19[%c0_71, %c0_72] : memref<16x128xf32, #tpu.memory_space<vmem>>, vector<16x128xf32>
      tpu.vector_store %arg19[%c0_71, %c0_72], %160 {strides = array<i32>} : memref<16x128xf32, #tpu.memory_space<vmem>>, vector<16x128xf32>,
    } else {
    }
    %c0 = arith.constant 0 : index
    %c0_1 = arith.constant 0 : index
    %3 = vector.load %arg19[%c0, %c0_1] : memref<16x128xf32, #tpu.memory_space<vmem>>, vector<16x128xf32>
    %4 = arith.truncf %3 : vector<16x128xf32> to vector<16x128xbf16>
    %c0_2 = arith.constant 0 : index
    %c0_3 = arith.constant 0 : index
    %c0_4 = arith.constant 0 : index
    %5 = vector.load %arg6[%c0_2, %c0_3, %c0_4] : memref<1x128x384xbf16, #tpu.memory_space<vmem>>, vector<1x128x384xbf16>
    %6 = vector.shape_cast %5 : vector<1x128x384xbf16> to vector<128x384xbf16>
    %cst = arith.constant dense<0.000000e+00> : vector<16x384xf32>
    %7 = tpu.matmul %4, %6, %cst {dimension_numbers = #tpu.dot_dimension_numbers<[1], [0], [0], [1], [0, 0, 1, 1], [], []>} : vector<16x128xbf16>, vector<128x384xbf16>, vector<16x384xf32> -> vector<16x384xf32>
    %c0_5 = arith.constant 0 : index
    %c0_6 = arith.constant 0 : index
    %c0_7 = arith.constant 0 : index
    %8 = vector.load %arg7[%c0_5, %c0_6, %c0_7] : memref<1x1x384xf32, #tpu.memory_space<vmem>>, vector<1x1x384xf32>
    %9 = vector.shape_cast %8 : vector<1x1x384xf32> to vector<1x384xf32>
    %10 = vector.broadcast %9 : vector<1x384xf32> to vector<16x384xf32>
    %11 = arith.addf %7, %10 : vector<16x384xf32>
    %12 = arith.truncf %11 : vector<16x384xf32> to vector<16x384xbf16>
    %13 = vector.extract_strided_slice %12 {offsets = [0, 0], sizes = [16, 128], strides = [1, 1]} : vector<16x384xbf16> to vector<16x128xbf16>
    %14 = vector.extract_strided_slice %12 {offsets = [0, 128], sizes = [16, 128], strides = [1, 1]} : vector<16x384xbf16> to vector<16x128xbf16>
    %15 = vector.extract_strided_slice %12 {offsets = [0, 256], sizes = [16, 128], strides = [1, 1]} : vector<16x384xbf16> to vector<16x128xbf16>
    %16 = vector.extract_strided_slice %13 {offsets = [0, 0], sizes = [16, 32], strides = [1, 1]} : vector<16x128xbf16> to vector<16x32xbf16>
    %17 = vector.extract_strided_slice %13 {offsets = [0, 32], sizes = [16, 32], strides = [1, 1]} : vector<16x128xbf16> to vector<16x32xbf16>
    %18 = vector.extract_strided_slice %13 {offsets = [0, 64], sizes = [16, 32], strides = [1, 1]} : vector<16x128xbf16> to vector<16x32xbf16>
    %19 = vector.extract_strided_slice %13 {offsets = [0, 96], sizes = [16, 32], strides = [1, 1]} : vector<16x128xbf16> to vector<16x32xbf16>
    %20 = vector.shape_cast %16 : vector<16x32xbf16> to vector<1x16x32xbf16>
    %21 = vector.shape_cast %17 : vector<16x32xbf16> to vector<1x16x32xbf16>
    %22 = vector.shape_cast %18 : vector<16x32xbf16> to vector<1x16x32xbf16>
    %23 = vector.shape_cast %19 : vector<16x32xbf16> to vector<1x16x32xbf16>
    %24 = tpu.concatenate %20, %21, %22, %23 in 0 : vector<1x16x32xbf16>, vector<1x16x32xbf16>, vector<1x16x32xbf16>, vector<1x16x32xbf16> -> vector<4x16x32xbf16>
    %25 = vector.extract_strided_slice %14 {offsets = [0, 0], sizes = [16, 32], strides = [1, 1]} : vector<16x128xbf16> to vector<16x32xbf16>
    %26 = vector.extract_strided_slice %14 {offsets = [0, 32], sizes = [16, 32], strides = [1, 1]} : vector<16x128xbf16> to vector<16x32xbf16>
    %27 = vector.extract_strided_slice %14 {offsets = [0, 64], sizes = [16, 32], strides = [1, 1]} : vector<16x128xbf16> to vector<16x32xbf16>
    %28 = vector.extract_strided_slice %14 {offsets = [0, 96], sizes = [16, 32], strides = [1, 1]} : vector<16x128xbf16> to vector<16x32xbf16>
    %29 = vector.shape_cast %25 : vector<16x32xbf16> to vector<1x16x32xbf16>
    %30 = vector.shape_cast %26 : vector<16x32xbf16> to vector<1x16x32xbf16>
    %31 = vector.shape_cast %27 : vector<16x32xbf16> to vector<1x16x32xbf16>
    %32 = vector.shape_cast %28 : vector<16x32xbf16> to vector<1x16x32xbf16>
    %33 = tpu.concatenate %29, %30, %31, %32 in 0 : vector<1x16x32xbf16>, vector<1x16x32xbf16>, vector<1x16x32xbf16>, vector<1x16x32xbf16> -> vector<4x16x32xbf16>
    %34 = vector.extract_strided_slice %15 {offsets = [0, 0], sizes = [16, 32], strides = [1, 1]} : vector<16x128xbf16> to vector<16x32xbf16>
    %35 = vector.extract_strided_slice %15 {offsets = [0, 32], sizes = [16, 32], strides = [1, 1]} : vector<16x128xbf16> to vector<16x32xbf16>
    %36 = vector.extract_strided_slice %15 {offsets = [0, 64], sizes = [16, 32], strides = [1, 1]} : vector<16x128xbf16> to vector<16x32xbf16>
    %37 = vector.extract_strided_slice %15 {offsets = [0, 96], sizes = [16, 32], strides = [1, 1]} : vector<16x128xbf16> to vector<16x32xbf16>
    %38 = vector.shape_cast %34 : vector<16x32xbf16> to vector<1x16x32xbf16>
    %39 = vector.shape_cast %35 : vector<16x32xbf16> to vector<1x16x32xbf16>
    %40 = vector.shape_cast %36 : vector<16x32xbf16> to vector<1x16x32xbf16>
    %41 = vector.shape_cast %37 : vector<16x32xbf16> to vector<1x16x32xbf16>
    %42 = tpu.concatenate %38, %39, %40, %41 in 0 : vector<1x16x32xbf16>, vector<1x16x32xbf16>, vector<1x16x32xbf16>, vector<1x16x32xbf16> -> vector<4x16x32xbf16>
    "tpu.trace_start"() <{level = 10 : i32, message = "hqd,hkd->hqk"}> : () -> ()
    %cst_8 = arith.constant dense<0.000000e+00> : vector<4x16x16xf32>
    %43 = tpu.matmul %24, %33, %cst_8 {dimension_numbers = #tpu.dot_dimension_numbers<[2], [2], [1], [1], [0, 0, 0, 1, 1, 1], [0], [0]>} : vector<4x16x32xbf16>, vector<4x16x32xbf16>, vector<4x16x16xf32> -> vector<4x16x16xf32>
    "tpu.trace_stop"() : () -> ()
    %c0_9 = arith.constant 0 : index
    %c0_10 = arith.constant 0 : index
    %c0_11 = arith.constant 0 : index
    %44 = vector.load %arg2[%c0_9, %c0_10, %c0_11] : memref<1x16x16xf32, #tpu.memory_space<vmem>>, vector<1x16x16xf32>
    %45 = vector.broadcast %44 : vector<1x16x16xf32> to vector<4x16x16xf32>
    %46 = arith.addf %43, %45 : vector<4x16x16xf32>
    %cst_12 = arith.constant dense<0xFF800000> : vector<4x16xf32>
    %47 = vector.multi_reduction <maximumf>, %46, %cst_12 [2] : vector<4x16x16xf32> to vector<4x16xf32>
    %48 = vector.shape_cast %47 : vector<4x16xf32> to vector<4x16x1xf32>
    %49 = vector.broadcast %48 : vector<4x16x1xf32> to vector<4x16x16xf32>
    %50 = arith.subf %46, %49 : vector<4x16x16xf32>
    %51 = math.exp %50 : vector<4x16x16xf32>
    %cst_13 = arith.constant dense<0.000000e+00> : vector<4x16xf32>
    %52 = vector.multi_reduction <add>, %51, %cst_13 [2] : vector<4x16x16xf32> to vector<4x16xf32>
    %53 = vector.shape_cast %52 : vector<4x16xf32> to vector<4x16x1xf32>
    %54 = tpu.reciprocal %53 {approx = true} : vector<4x16x1xf32> -> vector<4x16x1xf32>
    %55 = vector.broadcast %54 : vector<4x16x1xf32> to vector<4x16x16xf32>
    %56 = arith.mulf %51, %55 : vector<4x16x16xf32>
    %57 = arith.truncf %56 : vector<4x16x16xf32> to vector<4x16x16xbf16>
    "tpu.trace_start"() <{level = 10 : i32, message = "hqk,hkd->hqd"}> : () -> ()
    %cst_14 = arith.constant dense<0.000000e+00> : vector<4x16x32xf32>
    %58 = tpu.matmul %57, %42, %cst_14 {dimension_numbers = #tpu.dot_dimension_numbers<[2], [1], [1], [2], [0, 0, 0, 1, 1, 2], [0], [0]>} : vector<4x16x16xbf16>, vector<4x16x32xbf16>, vector<4x16x32xf32> -> vector<4x16x32xf32>
    "tpu.trace_stop"() : () -> ()
    %59 = vector.extract_strided_slice %58 {offsets = [0, 0, 0], sizes = [1, 16, 32], strides = [1, 1, 1]} : vector<4x16x32xf32> to vector<1x16x32xf32>
    %60 = vector.shape_cast %59 : vector<1x16x32xf32> to vector<16x32xf32>
    %61 = vector.extract_strided_slice %58 {offsets = [1, 0, 0], sizes = [1, 16, 32], strides = [1, 1, 1]} : vector<4x16x32xf32> to vector<1x16x32xf32>
    %62 = vector.shape_cast %61 : vector<1x16x32xf32> to vector<16x32xf32>
    %63 = vector.extract_strided_slice %58 {offsets = [2, 0, 0], sizes = [1, 16, 32], strides = [1, 1, 1]} : vector<4x16x32xf32> to vector<1x16x32xf32>
    %64 = vector.shape_cast %63 : vector<1x16x32xf32> to vector<16x32xf32>
    %65 = vector.extract_strided_slice %58 {offsets = [3, 0, 0], sizes = [1, 16, 32], strides = [1, 1, 1]} : vector<4x16x32xf32> to vector<1x16x32xf32>
    %66 = vector.shape_cast %65 : vector<1x16x32xf32> to vector<16x32xf32>
    %67 = tpu.concatenate %60, %62, %64, %66 in 1 : vector<16x32xf32>, vector<16x32xf32>, vector<16x32xf32>, vector<16x32xf32> -> vector<16x128xf32>
    %68 = arith.truncf %67 : vector<16x128xf32> to vector<16x128xbf16>
    %c0_15 = arith.constant 0 : index
    %c0_16 = arith.constant 0 : index
    %c0_17 = arith.constant 0 : index
    %69 = vector.load %arg8[%c0_15, %c0_16, %c0_17] : memref<1x128x128xbf16, #tpu.memory_space<vmem>>, vector<1x128x128xbf16>
    %70 = vector.shape_cast %69 : vector<1x128x128xbf16> to vector<128x128xbf16>
    %cst_18 = arith.constant dense<0.000000e+00> : vector<16x128xf32>
    %71 = tpu.matmul %68, %70, %cst_18 {dimension_numbers = #tpu.dot_dimension_numbers<[1], [0], [0], [1], [0, 0, 1, 1], [], []>} : vector<16x128xbf16>, vector<128x128xbf16>, vector<16x128xf32> -> vector<16x128xf32>
    %c0_19 = arith.constant 0 : index
    %c0_20 = arith.constant 0 : index
    %c0_21 = arith.constant 0 : index
    %72 = vector.load %arg9[%c0_19, %c0_20, %c0_21] : memref<1x1x128xf32, #tpu.memory_space<vmem>>, vector<1x1x128xf32>
    %73 = vector.shape_cast %72 : vector<1x1x128xf32> to vector<1x128xf32>
    %74 = vector.broadcast %73 : vector<1x128xf32> to vector<16x128xf32>
    %75 = arith.addf %71, %74 : vector<16x128xf32>
    %76 = arith.addf %75, %3 : vector<16x128xf32>
    %c0_22 = arith.constant 0 : index
    %c0_23 = arith.constant 0 : index
    %c0_24 = arith.constant 0 : index
    %77 = vector.load %arg10[%c0_22, %c0_23, %c0_24] : memref<1x1x128xf32, #tpu.memory_space<vmem>>, vector<1x1x128xf32>
    %78 = vector.shape_cast %77 : vector<1x1x128xf32> to vector<1x128xf32>
    %c0_25 = arith.constant 0 : index
    %c0_26 = arith.constant 0 : index
    %c0_27 = arith.constant 0 : index
    %79 = vector.load %arg11[%c0_25, %c0_26, %c0_27] : memref<1x1x128xf32, #tpu.memory_space<vmem>>, vector<1x1x128xf32>
    %80 = vector.shape_cast %79 : vector<1x1x128xf32> to vector<1x128xf32>
    %cst_28 = arith.constant dense<0.000000e+00> : vector<16xf32>
    %81 = vector.multi_reduction <add>, %76, %cst_28 [1] : vector<16x128xf32> to vector<16xf32>
    %82 = vector.shape_cast %81 : vector<16xf32> to vector<16x1xf32>
    %cst_29 = arith.constant 1.280000e+02 : f32
    %83 = vector.broadcast %cst_29 : f32 to vector<16x1xf32>
    %84 = arith.divf %82, %83 : vector<16x1xf32>
    %85 = vector.broadcast %84 : vector<16x1xf32> to vector<16x128xf32>
    %86 = arith.subf %76, %85 : vector<16x128xf32>
    %87 = arith.mulf %86, %86 : vector<16x128xf32>
    %cst_30 = arith.constant dense<0.000000e+00> : vector<16xf32>
    %88 = vector.multi_reduction <add>, %87, %cst_30 [1] : vector<16x128xf32> to vector<16xf32>
    %89 = vector.shape_cast %88 : vector<16xf32> to vector<16x1xf32>
    %cst_31 = arith.constant 1.280000e+02 : f32
    %90 = vector.broadcast %cst_31 : f32 to vector<16x1xf32>
    %91 = arith.divf %89, %90 : vector<16x1xf32>
    %92 = vector.broadcast %84 : vector<16x1xf32> to vector<16x128xf32>
    %93 = arith.subf %76, %92 : vector<16x128xf32>
    %cst_32 = arith.constant 9.99999974E-6 : f32
    %94 = vector.broadcast %cst_32 : f32 to vector<16x1xf32>
    %95 = arith.addf %91, %94 : vector<16x1xf32>
    %96 = math.rsqrt %95 : vector<16x1xf32>
    %97 = vector.broadcast %96 : vector<16x1xf32> to vector<16x128xf32>
    %98 = arith.mulf %93, %97 : vector<16x128xf32>
    %99 = vector.broadcast %78 : vector<1x128xf32> to vector<16x128xf32>
    %100 = arith.mulf %98, %99 : vector<16x128xf32>
    %101 = vector.broadcast %80 : vector<1x128xf32> to vector<16x128xf32>
    %102 = arith.addf %100, %101 : vector<16x128xf32>
    %103 = arith.truncf %102 : vector<16x128xf32> to vector<16x128xbf16>
    %c0_33 = arith.constant 0 : index
    %c0_34 = arith.constant 0 : index
    %c0_35 = arith.constant 0 : index
    %104 = vector.load %arg12[%c0_33, %c0_34, %c0_35] : memref<1x128x512xbf16, #tpu.memory_space<vmem>>, vector<1x128x512xbf16>
    %105 = vector.shape_cast %104 : vector<1x128x512xbf16> to vector<128x512xbf16>
    %cst_36 = arith.constant dense<0.000000e+00> : vector<16x512xf32>
    %106 = tpu.matmul %103, %105, %cst_36 {dimension_numbers = #tpu.dot_dimension_numbers<[1], [0], [0], [1], [0, 0, 1, 1], [], []>} : vector<16x128xbf16>, vector<128x512xbf16>, vector<16x512xf32> -> vector<16x512xf32>
    %c0_37 = arith.constant 0 : index
    %c0_38 = arith.constant 0 : index
    %c0_39 = arith.constant 0 : index
    %107 = vector.load %arg13[%c0_37, %c0_38, %c0_39] : memref<1x1x512xf32, #tpu.memory_space<vmem>>, vector<1x1x512xf32>
    %108 = vector.shape_cast %107 : vector<1x1x512xf32> to vector<1x512xf32>
    %109 = vector.broadcast %108 : vector<1x512xf32> to vector<16x512xf32>
    %110 = arith.addf %106, %109 : vector<16x512xf32>
    %cst_40 = arith.constant 0.000000e+00 : f32
    %111 = vector.broadcast %cst_40 : f32 to vector<16x512xf32>
    %112 = arith.maximumf %110, %111 : vector<16x512xf32>
    %113 = arith.truncf %112 : vector<16x512xf32> to vector<16x512xbf16>
    %c0_41 = arith.constant 0 : index
    %c0_42 = arith.constant 0 : index
    %c0_43 = arith.constant 0 : index
    %114 = vector.load %arg14[%c0_41, %c0_42, %c0_43] : memref<1x512x128xbf16, #tpu.memory_space<vmem>>, vector<1x512x128xbf16>
    %115 = vector.shape_cast %114 : vector<1x512x128xbf16> to vector<512x128xbf16>
    %cst_44 = arith.constant dense<0.000000e+00> : vector<16x128xf32>
    %116 = tpu.matmul %113, %115, %cst_44 {dimension_numbers = #tpu.dot_dimension_numbers<[1], [0], [0], [1], [0, 0, 1, 1], [], []>} : vector<16x512xbf16>, vector<512x128xbf16>, vector<16x128xf32> -> vector<16x128xf32>
    %c0_45 = arith.constant 0 : index
    %c0_46 = arith.constant 0 : index
    %c0_47 = arith.constant 0 : index
    %117 = vector.load %arg15[%c0_45, %c0_46, %c0_47] : memref<1x1x128xf32, #tpu.memory_space<vmem>>, vector<1x1x128xf32>
    %118 = vector.shape_cast %117 : vector<1x1x128xf32> to vector<1x128xf32>
    %119 = vector.broadcast %118 : vector<1x128xf32> to vector<16x128xf32>
    %120 = arith.addf %116, %119 : vector<16x128xf32>
    %121 = arith.addf %120, %102 : vector<16x128xf32>
    %c0_48 = arith.constant 0 : index
    %c0_49 = arith.constant 0 : index
    %c0_50 = arith.constant 0 : index
    %122 = vector.load %arg16[%c0_48, %c0_49, %c0_50] : memref<1x1x128xf32, #tpu.memory_space<vmem>>, vector<1x1x128xf32>
    %123 = vector.shape_cast %122 : vector<1x1x128xf32> to vector<1x128xf32>
    %c0_51 = arith.constant 0 : index
    %c0_52 = arith.constant 0 : index
    %c0_53 = arith.constant 0 : index
    %124 = vector.load %arg17[%c0_51, %c0_52, %c0_53] : memref<1x1x128xf32, #tpu.memory_space<vmem>>, vector<1x1x128xf32>
    %125 = vector.shape_cast %124 : vector<1x1x128xf32> to vector<1x128xf32>
    %cst_54 = arith.constant dense<0.000000e+00> : vector<16xf32>
    %126 = vector.multi_reduction <add>, %121, %cst_54 [1] : vector<16x128xf32> to vector<16xf32>
    %127 = vector.shape_cast %126 : vector<16xf32> to vector<16x1xf32>
    %cst_55 = arith.constant 1.280000e+02 : f32
    %128 = vector.broadcast %cst_55 : f32 to vector<16x1xf32>
    %129 = arith.divf %127, %128 : vector<16x1xf32>
    %130 = vector.broadcast %129 : vector<16x1xf32> to vector<16x128xf32>
    %131 = arith.subf %121, %130 : vector<16x128xf32>
    %132 = arith.mulf %131, %131 : vector<16x128xf32>
    %cst_56 = arith.constant dense<0.000000e+00> : vector<16xf32>
    %133 = vector.multi_reduction <add>, %132, %cst_56 [1] : vector<16x128xf32> to vector<16xf32>
    %134 = vector.shape_cast %133 : vector<16xf32> to vector<16x1xf32>
    %cst_57 = arith.constant 1.280000e+02 : f32
    %135 = vector.broadcast %cst_57 : f32 to vector<16x1xf32>
    %136 = arith.divf %134, %135 : vector<16x1xf32>
    %137 = vector.broadcast %129 : vector<16x1xf32> to vector<16x128xf32>
    %138 = arith.subf %121, %137 : vector<16x128xf32>
    %cst_58 = arith.constant 9.99999974E-6 : f32
    %139 = vector.broadcast %cst_58 : f32 to vector<16x1xf32>
    %140 = arith.addf %136, %139 : vector<16x1xf32>
    %141 = math.rsqrt %140 : vector<16x1xf32>
    %142 = vector.broadcast %141 : vector<16x1xf32> to vector<16x128xf32>
    %143 = arith.mulf %138, %142 : vector<16x128xf32>
    %144 = vector.broadcast %123 : vector<1x128xf32> to vector<16x128xf32>
    %145 = arith.mulf %143, %144 : vector<16x128xf32>
    %146 = vector.broadcast %125 : vector<1x128xf32> to vector<16x128xf32>
    %147 = arith.addf %145, %146 : vector<16x128xf32>
    %c0_59 = arith.constant 0 : index
    %c0_60 = arith.constant 0 : index
    %148 = vector.load %arg19[%c0_59, %c0_60] : memref<16x128xf32, #tpu.memory_space<vmem>>, vector<16x128xf32>
    tpu.vector_store %arg19[%c0_59, %c0_60], %147 {strides = array<i32>} : memref<16x128xf32, #tpu.memory_space<vmem>>, vector<16x128xf32>,
    %c1_i32 = arith.constant 1 : i32
    %149 = arith.cmpi eq, %arg0, %c1_i32 : i32
    %150 = arith.extui %149 : i1 to i32
    %c0_i32_61 = arith.constant 0 : i32
    %151 = arith.cmpi ne, %150, %c0_i32_61 : i32
    scf.if %151 {
      %c0_62 = arith.constant 0 : index
      %c0_63 = arith.constant 0 : index
      %152 = vector.load %arg18[%c0_62, %c0_63] : memref<16x128xf32, #tpu.memory_space<vmem>>, vector<16x128xf32>
      tpu.vector_store %arg18[%c0_62, %c0_63], %147 {strides = array<i32>} : memref<16x128xf32, #tpu.memory_space<vmem>>, vector<16x128xf32>,
    } else {
    }
    return
  }
  func.func @transform_0(%arg0: i32) -> (i32, i32) {
    %c0_i32 = arith.constant 0 : i32
    %c0_i32_0 = arith.constant 0 : i32
    %c0_i32_1 = arith.constant 0 : i32
    return %c0_i32, %c0_i32_0 : i32, i32
  }
  func.func @transform_1(%arg0: i32) -> (i32, i32, i32) {
    %c0_i32 = arith.constant 0 : i32
    %c0_i32_0 = arith.constant 0 : i32
    %c0_i32_1 = arith.constant 0 : i32
    %c0_i32_2 = arith.constant 0 : i32
    return %c0_i32, %c0_i32_0, %c0_i32_1 : i32, i32, i32
  }
  func.func @transform_2(%arg0: i32) -> (i32, i32) {
    %c0_i32 = arith.constant 0 : i32
    %c0_i32_0 = arith.constant 0 : i32
    %c0_i32_1 = arith.constant 0 : i32
    return %c0_i32, %c0_i32_0 : i32, i32
  }
  func.func @transform_3(%arg0: i32) -> (i32, i32) {
    %c0_i32 = arith.constant 0 : i32
    %c0_i32_0 = arith.constant 0 : i32
    %c0_i32_1 = arith.constant 0 : i32
    return %c0_i32, %c0_i32_0 : i32, i32
  }
  func.func @transform_4(%arg0: i32) -> (i32, i32) {
    %c0_i32 = arith.constant 0 : i32
    %c0_i32_0 = arith.constant 0 : i32
    %c0_i32_1 = arith.constant 0 : i32
    return %c0_i32, %c0_i32_0 : i32, i32
  }
  func.func @transform_5(%arg0: i32) -> (i32, i32, i32) {
    %c0_i32 = arith.constant 0 : i32
    %c0_i32_0 = arith.constant 0 : i32
    %c0_i32_1 = arith.constant 0 : i32
    return %arg0, %c0_i32, %c0_i32_0 : i32, i32, i32
  }
  func.func @transform_6(%arg0: i32) -> (i32, i32, i32) {
    %c0_i32 = arith.constant 0 : i32
    %c0_i32_0 = arith.constant 0 : i32
    %c0_i32_1 = arith.constant 0 : i32
    return %arg0, %c0_i32, %c0_i32_0 : i32, i32, i32
  }
  func.func @transform_7(%arg0: i32) -> (i32, i32, i32) {
    %c0_i32 = arith.constant 0 : i32
    %c0_i32_0 = arith.constant 0 : i32
    %c0_i32_1 = arith.constant 0 : i32
    return %arg0, %c0_i32, %c0_i32_0 : i32, i32, i32
  }
  func.func @transform_8(%arg0: i32) -> (i32, i32, i32) {
    %c0_i32 = arith.constant 0 : i32
    %c0_i32_0 = arith.constant 0 : i32
    %c0_i32_1 = arith.constant 0 : i32
    return %arg0, %c0_i32, %c0_i32_0 : i32, i32, i32
  }
  func.func @transform_9(%arg0: i32) -> (i32, i32, i32) {
    %c0_i32 = arith.constant 0 : i32
    %c0_i32_0 = arith.constant 0 : i32
    %c0_i32_1 = arith.constant 0 : i32
    return %arg0, %c0_i32, %c0_i32_0 : i32, i32, i32
  }
  func.func @transform_10(%arg0: i32) -> (i32, i32, i32) {
    %c0_i32 = arith.constant 0 : i32
    %c0_i32_0 = arith.constant 0 : i32
    %c0_i32_1 = arith.constant 0 : i32
    return %arg0, %c0_i32, %c0_i32_0 : i32, i32, i32
  }
  func.func @transform_11(%arg0: i32) -> (i32, i32, i32) {
    %c0_i32 = arith.constant 0 : i32
    %c0_i32_0 = arith.constant 0 : i32
    %c0_i32_1 = arith.constant 0 : i32
    return %arg0, %c0_i32, %c0_i32_0 : i32, i32, i32
  }
  func.func @transform_12(%arg0: i32) -> (i32, i32, i32) {
    %c0_i32 = arith.constant 0 : i32
    %c0_i32_0 = arith.constant 0 : i32
    %c0_i32_1 = arith.constant 0 : i32
    return %arg0, %c0_i32, %c0_i32_0 : i32, i32, i32
  }
  func.func @transform_13(%arg0: i32) -> (i32, i32, i32) {
    %c0_i32 = arith.constant 0 : i32
    %c0_i32_0 = arith.constant 0 : i32
    %c0_i32_1 = arith.constant 0 : i32
    return %arg0, %c0_i32, %c0_i32_0 : i32, i32, i32
  }
  func.func @transform_14(%arg0: i32) -> (i32, i32, i32) {
    %c0_i32 = arith.constant 0 : i32
    %c0_i32_0 = arith.constant 0 : i32
    %c0_i32_1 = arith.constant 0 : i32
    return %arg0, %c0_i32, %c0_i32_0 : i32, i32, i32
  }
  func.func @transform_15(%arg0: i32) -> (i32, i32, i32) {
    %c0_i32 = arith.constant 0 : i32
    %c0_i32_0 = arith.constant 0 : i32
    %c0_i32_1 = arith.constant 0 : i32
    return %arg0, %c0_i32, %c0_i32_0 : i32, i32, i32
  }
  func.func @transform_16(%arg0: i32) -> (i32, i32, i32) {
    %c0_i32 = arith.constant 0 : i32
    %c0_i32_0 = arith.constant 0 : i32
    %c0_i32_1 = arith.constant 0 : i32
    return %arg0, %c0_i32, %c0_i32_0 : i32, i32, i32
  }
  func.func @transform_17(%arg0: i32) -> (i32, i32) {
    %c0_i32 = arith.constant 0 : i32
    %c0_i32_0 = arith.constant 0 : i32
    %c0_i32_1 = arith.constant 0 : i32
    return %c0_i32, %c0_i32_0 : i32, i32
  }
}

</mosaic_0001>

<bundles_post_ra>
// kernel: tpu_custom_call.1
= control target key start
LH: loop header
LB: loop body
LE: loop exit
PB: predicated region body
PF: predicated region fallthrough
CT: control target
= control target key end

     0   :  { %s4639_s0 = inlined_call_operand.hbm [shape: f32[16,16], index: 0, kind: input, shape index: {}]   ;;  %s4640_s1 = inlined_call_operand.hbm [shape: f32[1,16,16], index: 1, kind: input, shape index: {}]   ;;  %s4641_s2 = inlined_call_operand.hbm [shape: bf16[16,128], index: 2, kind: input, shape index: {}]   ;;  %s4642_s3 = inlined_call_operand.hbm [shape: f32[1,128], index: 3, kind: input, shape index: {}]   ;;  %s4643_s4 = inlined_call_operand.hbm [shape: f32[16,128], index: 4, kind: input, shape index: {}]   ;;  %s4644_s5 = inlined_call_operand.hbm [shape: bf16[2,128,384], index: 5, kind: input, shape index: {}]   ;;  %s4645_s6 = inlined_call_operand.vmem [shape: f32[2,1,384], index: 6, kind: input, shape index: {}]   ;;  %s4646_s7 = inlined_call_operand.hbm [shape: bf16[2,128,128], index: 7, kind: input, shape index: {}]   ;;  %s4647_s8 = inlined_call_operand.vmem [shape: f32[2,1,128], index: 8, kind: input, shape index: {}]   ;;  %s4648_s9 = inlined_call_operand.vmem [shape: f32[2,1,128], index: 9, kind: input, shape index: {}]   ;;  %s4649_s10 = inlined_call_operand.vmem [shape: f32[2,1,128], index: 10, kind: input, shape index: {}]   ;;  %s4650_s11 = inlined_call_operand.hbm [shape: bf16[2,128,512], index: 11, kind: input, shape index: {}]   ;;  %s4651_s12 = inlined_call_operand.vmem [shape: f32[2,1,512], index: 12, kind: input, shape index: {}]   ;;  %s4652_s13 = inlined_call_operand.hbm [shape: bf16[2,512,128], index: 13, kind: input, shape index: {}]   ;;  %s4653_s14 = inlined_call_operand.vmem [shape: f32[2,1,128], index: 14, kind: input, shape index: {}]   ;;  %s4654_s15 = inlined_call_operand.vmem [shape: f32[2,1,128], index: 15, kind: input, shape index: {}]   ;;  %s4655_s16 = inlined_call_operand.vmem [shape: f32[2,1,128], index: 16, kind: input, shape index: {}]   ;;  %s4656_s17 = inlined_call_operand.hbm [shape: f32[16,128], index: 17, kind: output, shape index: {}]  }
   0x1   :  { %4689 = sst [smem:[#allocation33_spill]] %s4639_s0 }
   0x2   :  { %4690 = sst [smem:[#allocation34_spill]] %s4640_s1 }
   0x3   :  { %4691 = sst [smem:[#allocation35_spill]] %s4641_s2 }
   0x4   :  { %4692 = sst [smem:[#allocation36_spill]] %s4642_s3 }
   0x5   :  { %4693 = sst [smem:[#allocation37_spill]] %s4644_s5 }
   0x6   :  { %4694 = sst [smem:[#allocation38_spill]] %s4645_s6 }
   0x7   :  { %4695 = sst [smem:[#allocation39_spill]] %s4647_s8 }
   0x8   :  { %4696 = sst [smem:[#allocation40_spill]] %s4648_s9 }
   0x9   :  { %4697 = sst [smem:[#allocation41_spill]] %s4649_s10 }
   0xa   :  { %4698 = sst [smem:[#allocation42_spill]] %s4650_s11 }
   0xb   :  { %4699 = sst [smem:[#allocation43_spill]] %s4651_s12 }
   0xc   :  { %4700 = sst [smem:[#allocation44_spill]] %s4653_s14 }
   0xd   :  { %4701 = sst [smem:[#allocation45_spill]] %s4654_s15 }
   0xe   :  { %4702 = sst [smem:[#allocation46_spill]] %s4655_s16 }
   0xf   :  { %4703 = sst [smem:[#allocation47_spill]] %s4656_s17 }
  0x10   :  { %22 = vsyncpa [#allocation4], 0 }
  0x11   :  { %23 = vsyncpa [#allocation7], 0 }
  0x12   :  { %24 = vsyncpa [#allocation10], 0 }
  0x13   :  { %25 = vsyncpa [#allocation13], 0 }
  0x14   :  { %27 = vsyncpa [#allocation13 + $0x1], 0 }
  0x15   :  { %28 = vsyncpa [#allocation16], 0 }
  0x16   :  { %30 = vsyncpa [#allocation16 + $0x1], 0 }
  0x17   :  { %31 = vsyncpa [#allocation5], 0  ;;  %s3923_s24 = smov 0   ;;  %s3925_s25 = smov 0  }
  0x18   :  { %s3927_s26 = smov 0   ;;  %s3929_s27 = smov 0  }
  0x19 LB: > { %4704 = sst [smem:[#allocation25_spill]] %s3795_s25  ;;  %s3944_s28 = sadd.s32 4294967295, %s3803_s27   ;;  %s3803_s27 = sphi %s3929_s27, %s4766_s27   ;;  %s3799_s26 = sphi %s3927_s26, %s4769_s26   ;;  %s3795_s25 = sphi %s3925_s25, %s4768_s25   ;;  %s3791_s24 = sphi %s3923_s24, %s4767_s24  }
  0x1a   : > { %4705 = sst [smem:[#allocation26_spill]] %s3799_s26  ;;  %p2830_p0 = scmp.ge.s32.totalorder %s3803_s27, 1 }
  0x1b   : > { %4706 = sst [smem:[#allocation27_spill]] %s3944_s28  ;;  %p4660_p1 = scmp.eq.s32.totalorder %s3944_s28, 0 }
  0x1c   : > { %p480_p2 = scmp.lt.s32.totalorder %s3803_s27, 3  ;;  %s3805_s0 = smov [#allocation6]  }
  0x1d   : > { %s505_s30 = sshll.u32 %s3805_s0, 4  ;;  %s3806_s18 = smov [#allocation9]   ;;  %s506_s30 = int_to_ptr.vmem [resolvable:$true] %s505_s30 }
  0x1e   : > { %p3950_p4 = pnand %p2830_p0, %p480_p2  ;;  %s532_s19 = sshll.u32 %s3806_s18, 4  ;;  %s3962_s19 = int_to_ptr.vmem [resolvable:$true] %s532_s19 }
  0x1f   : > { %s4710_s22 = sld [smem:[#allocation34_spill]] }
  0x20   : > { %s4707_s29 = scalar_select %p3950_p4, 1, 0 }
  0x21   : > { %p3189_p5 = pneg %p3950_p4 }
  0x22   : > { %4708 = sst [smem:[#allocation28_spill]] %s4707_s29 }
  0x23   : > { %p3958_p6 = pnand %p3189_p5, %p4660_p1 }
  0x25   : > { %s4709_s1 = scalar_select %p3958_p6, 1, 0 }
  0x26   : > { %s3463_s23 = scalar_lea.hbm %s4710_s22, 256  ;;  %p3972_p8 = pneg %p3958_p6 }
  0x27   : > { %p3464_p7 = scmp.ne.s32.totalorder %s4710_s22, %s3463_s23  ;;  %p3470_p11 = scmp.lt.u32.totalorder %s3463_s23, %s4710_s22 }
  0x28   : > { %s4711_s0 = scalar_select %p3972_p8, 1, 0 }
  0x29   : > { %p3466_p9 = pnand %p3972_p8, %p3464_p7 }
  0x2b   : > { %p3467_p10 = pneg %p3466_p9 }
  0x2d   : > { %p3472_p12 = pnand %p3470_p11, %p3467_p10 }
  0x2f   : > { %3475 = shalt.err (!%p3472_p12)
}
  0x30   : > { %s3476_s20 = scalar_lea.vmem %s506_s30, 256  ;;  %p3484_p5 = scmp.lt.s32.totalorder %s506_s30, %s506_s30 }
  0x31   : > { %p3477_p13 = scmp.ne.s32.totalorder %s506_s30, %s3476_s20  ;;  %p3485_p3 = scmp.lt.s32.totalorder %s3476_s20, %s3476_s20 }
  0x33   : > { %p3479_p0 = pnand %p3477_p13, %p3972_p8  ;;  %p3486_p1 = por %p3485_p3, %p3484_p5 }
  0x35   : > { %p3480_p2 = pneg %p3479_p0 }
  0x37   : > { %p3487_p4 = pnand %p3486_p1, %p3480_p2 }
  0x39   : > { %3490 = shalt.err (!%p3487_p4)
}
  0x3a   : > { %s4662_s16 = smov 128   ;;  %s4664_s17 = smov 8  }
  0x3b   : > { %3195 = dma.hbm_to_vmem [thread:$0]  (!%p3958_p6), %s4710_s22, 256, %s506_s30, [#allocation7], %s4662_s16, %s4662_s16, %s4664_s17  }
  0x3c   : > { %s4712_s3 = sld [smem:[#allocation36_spill]] }
  0x42   : > { %s3491_s14 = scalar_lea.hbm %s4712_s3, 16 }
  0x43   : > { %p3492_p1 = scmp.ne.s32.totalorder %s4712_s3, %s3491_s14  ;;  %p3498_p7 = scmp.lt.u32.totalorder %s3491_s14, %s4712_s3 }
  0x45   : > { %p3494_p3 = pnand %p3492_p1, %p3972_p8 }
  0x47   : > { %p3495_p4 = pneg %p3494_p3 }
  0x49   : > { %p3500_p9 = pnand %p3498_p7, %p3495_p4 }
  0x4b   : > { %3503 = shalt.err (!%p3500_p9)
}
  0x4c   : > { %s3504_s30 = scalar_lea.vmem %s3962_s19, 16  ;;  %s3511_s12 = scalar_lea.vmem %s3962_s19, 32 }
  0x4d   : > { %p3505_p10 = scmp.ne.s32.totalorder %s3962_s19, %s3504_s30  ;;  %p3512_p13 = scmp.lt.s32.totalorder %s3962_s19, %s3962_s19 }
  0x4e   : > { %p3513_p0 = scmp.lt.s32.totalorder %s3511_s12, %s3504_s30 }
  0x4f   : > { %p3507_p11 = pnand %p3505_p10, %p3972_p8 }
  0x50   : > { %p3514_p2 = por %p3513_p0, %p3512_p13 }
  0x51   : > { %p3508_p12 = pneg %p3507_p11 }
  0x53   : > { %p3515_p5 = pnand %p3514_p2, %p3508_p12 }
  0x55   : > { %3518 = shalt.err (!%p3515_p5)
}
  0x56   : > { %3201 = dma.hbm_to_vmem [thread:$0]  (!%p3958_p6), %s4712_s3, 16, %s3962_s19, [#allocation10]  }
  0x57   : > { %s4016_s14 = sadd.s32 1, %s3803_s27   ;;  %s149_s15 = sadd.s32 1, %s3799_s26 }
  0x58   : > { %4713 = sst [smem:[#allocation29_spill]] %s4016_s14  ;;  %s146_s21 = ssub.s32 %s3803_s27, %s4016_s14 }
  0x59   : > { %p156_p1 = scmp.ne.s32.totalorder %s3799_s26, %s3795_s25  ;;  %p147_p3 = scmp.eq.s32.totalorder %s146_s21, 0 }
  0x5a   : > { %p157_p4 = scmp.eq.s32.totalorder %s3803_s27, 0  ;;  %p162_p7 = scmp.ne.s32.totalorder %s3795_s25, %s3791_s24 }
  0x5b   : > { %p3223_p9 = scmp.lt.s32.totalorder %s3803_s27, 2  ;;  %p4715_p11 = scmp.eq.s32.totalorder %s3944_s28, 0 }
  0x5c   : > { %s4028_s23 = scalar_select %p147_p3, %s3799_s26, %s149_s15  }
  0x5d   : > { %p158_p10 = por %p157_p4, %p156_p1  ;;  %p4032_p12 = por %p4715_p11, %p162_p7 }
  0x5e   : > { %4714 = sst [smem:[#allocation30_spill]] %s4028_s23  ;;  %s4667_s19 = sand.u32 1, %s3803_s27  }
  0x5f   : > { %s4716_s18 = scalar_select %p4032_p12, 1, 0 }
  0x60   : > { %s4038_s20 = sand.u32 1, %s3799_s26   ;;  %s3154_s12 = smul.u32 3072, %s3803_s27 }
  0x61   : > { %4717 = sst [smem:[#allocation31_spill]] %s4716_s18  ;;  %s3153_s30 = smul.u32 192, %s4038_s20 }
  0x62   : > { %p4042_p13 = pnand %p3223_p9, %p158_p10  ;;  %s4719_s5 = sld [smem:[#allocation37_spill]] }
  0x63   : > { %s560_s21 = scalar_lea.vmem [#allocation12], %s3153_s30  ;;  %s4055_s17 = scalar_lea.sflag [#allocation13], %s4667_s19 }
  0x64   : > { %s4718_s6 = scalar_select %p4042_p13, 1, 0 }
  0x65   : > { %s567_s16 = sshll.u32 %s560_s21, 4  ;;  %p4061_p2 = pneg %p4042_p13  ;;  %s4051_s16 = int_to_ptr.vmem [resolvable:$true] %s567_s16 }
  0x67   : > { %s4720_s22 = scalar_select %p4061_p2, 1, 0 }
  0x68   : > { %s4049_s15 = scalar_lea.hbm %s4719_s5, %s3154_s12  ;;  %s3524_s30 = scalar_lea.hbm %s4719_s5, 6144 }
  0x69   : > { %s3519_s3 = scalar_lea.hbm %s4049_s15, 3072  ;;  %p3525_p3 = scmp.lt.u32.totalorder %s4049_s15, %s4719_s5 }
  0x6a   : > { %p3520_p0 = scmp.ne.s32.totalorder %s4049_s15, %s3519_s3  ;;  %p3526_p4 = scmp.lt.u32.totalorder %s3524_s30, %s3519_s3 }
  0x6b   : > { %p3528_p9 = scmp.lt.u32.totalorder %s3519_s3, %s4049_s15 }
  0x6c   : > { %p3522_p5 = pnand %p4061_p2, %p3520_p0  ;;  %p3527_p7 = por %p3526_p4, %p3525_p3 }
  0x6e   : > { %p3523_p1 = pneg %p3522_p5  ;;  %p3529_p10 = por %p3528_p9, %p3527_p7 }
  0x70   : > { %p3530_p11 = pnand %p3529_p10, %p3523_p1 }
  0x72   : > { %3533 = shalt.err (!%p3530_p11)
}
  0x73   : > { %s3534_s19 = scalar_lea.vmem %s4051_s16, 3072  ;;  %s3809_s12 = smov [#allocation12]  }
  0x74   : > { %p3535_p0 = scmp.ne.s32.totalorder %s4051_s16, %s3534_s19  ;;  %s3539_s24 = sshll.u32 %s3809_s12, 4  ;;  %s3540_s24 = int_to_ptr.vmem [resolvable:$false] %s3539_s24 }
  0x75   : > { %s3541_s10 = scalar_lea.vmem %s3540_s24, 6144  ;;  %p3542_p6 = scmp.lt.s32.totalorder %s4051_s16, %s3540_s24 }
  0x76   : > { %p3537_p5 = pnand %p3535_p0, %p4061_p2  ;;  %p3543_p8 = scmp.lt.s32.totalorder %s3541_s10, %s3534_s19 }
  0x78   : > { %p3538_p12 = pneg %p3537_p5  ;;  %p3544_p3 = por %p3543_p8, %p3542_p6 }
  0x7a   : > { %p3545_p4 = pnand %p3544_p3, %p3538_p12 }
  0x7c   : > { %3548 = shalt.err (!%p3545_p4)
}
  0x7d   : > { %s3810_s3 = smov 192   ;;  %s3811_s30 = smov 12  }
  0x7e   : > { %3208 = dma.hbm_to_vmem [thread:$0]  (!%p4042_p13), %s4049_s15, 3072, %s4051_s16, %s4055_s17, %s3810_s3, %s3810_s3, %s3811_s30  }
  0x7f   : > { %s2841_s21 = sshll.u32 %s4038_s20, 8  ;;  %s2977_s12 = sshll.u32 %s3803_s27, 12 }
  0x80   : > { %s4721_s11 = sld [smem:[#allocation42_spill]]  ;;  %s627_s5 = scalar_lea.vmem [#allocation15], %s2841_s21 }
  0x81   : > { %s634_s23 = sshll.u32 %s627_s5, 4  ;;  %s4722_s26 = sand.u32 1, %s3803_s27   ;;  %s4096_s23 = int_to_ptr.vmem [resolvable:$true] %s634_s23 }
  0x82   : > { %s4100_s14 = scalar_lea.sflag [#allocation16], %s4722_s26 }
  0x83   : > { %4723 = sst [smem:[#allocation32_spill]] %s4100_s14 }
  0x86   : > { %s4092_s10 = scalar_lea.hbm %s4721_s11, %s2977_s12  ;;  %s3554_s30 = scalar_lea.hbm %s4721_s11, 8192 }
  0x87   : > { %s3549_s16 = scalar_lea.hbm %s4092_s10, 4096  ;;  %p3555_p1 = scmp.lt.u32.totalorder %s4092_s10, %s4721_s11 }
  0x88   : > { %p3550_p6 = scmp.ne.s32.totalorder %s4092_s10, %s3549_s16  ;;  %p3556_p7 = scmp.lt.u32.totalorder %s3554_s30, %s3549_s16 }
  0x89   : > { %p3558_p10 = scmp.lt.u32.totalorder %s3549_s16, %s4092_s10 }
  0x8a   : > { %p3552_p8 = pnand %p3550_p6, %p4061_p2  ;;  %p3557_p9 = por %p3556_p7, %p3555_p1 }
  0x8c   : > { %p3553_p12 = pneg %p3552_p8  ;;  %p3559_p11 = por %p3558_p10, %p3557_p9 }
  0x8e   : > { %p3560_p0 = pnand %p3559_p11, %p3553_p12 }
  0x90   : > { %3563 = shalt.err (!%p3560_p0)
}
  0x91   : > { %s3564_s5 = scalar_lea.vmem %s4096_s23, 4096  ;;  %s3812_s26 = smov [#allocation15]  }
  0x92   : > { %p3565_p5 = scmp.ne.s32.totalorder %s4096_s23, %s3564_s5  ;;  %s3569_s15 = sshll.u32 %s3812_s26, 4  ;;  %s3570_s15 = int_to_ptr.vmem [resolvable:$false] %s3569_s15 }
  0x93   : > { %s3571_s3 = scalar_lea.vmem %s3570_s15, 8192  ;;  %p3572_p6 = scmp.lt.s32.totalorder %s4096_s23, %s3570_s15 }
  0x94   : > { %p3567_p3 = pnand %p3565_p5, %p4061_p2  ;;  %p3573_p8 = scmp.lt.s32.totalorder %s3571_s3, %s3564_s5 }
  0x96   : > { %p3568_p4 = pneg %p3567_p3  ;;  %p3574_p1 = por %p3573_p8, %p3572_p6 }
  0x98   : > { %p3575_p7 = pnand %p3574_p1, %p3568_p4 }
  0x9a   : > { %3578 = shalt.err (!%p3575_p7)
}
  0x9b   : > { %s3813_s16 = smov 256   ;;  %s3814_s30 = smov 16  }
  0x9c   : > { %3214 = dma.hbm_to_vmem [thread:$0]  (!%p4042_p13), %s4092_s10, 4096, %s4096_s23, %s4100_s14, %s3813_s16, %s3813_s16, %s3814_s30  }
  0x9d   : > { %s4129_s26 = scalar_lea.hbm %s4652_s13, %s2977_s12  ;;  %s655_s5 = scalar_lea.vmem [#allocation17], %s2841_s21 }
  0x9e   : > { %s662_s15 = sshll.u32 %s655_s5, 4  ;;  %s3815_s3 = smov [#allocation3]   ;;  %s4133_s15 = int_to_ptr.vmem [resolvable:$true] %s662_s15 }
  0x9f   : > { %s492_s11 = sshll.u32 %s3815_s3, 4  ;;  %s4724_s18 = sld [smem:[#allocation33_spill]]  ;;  %s493_s11 = int_to_ptr.vmem [resolvable:$true] %s492_s11 }
  0xa0   : > { %p4725_p9 = scmp.ne.s32.totalorder %s4711_s0, 0 }
  0xa5   : > { %s3579_s25 = scalar_lea.hbm %s4724_s18, 256 }
  0xa6   : > { %p3580_p12 = scmp.ne.s32.totalorder %s4724_s18, %s3579_s25  ;;  %p3586_p0 = scmp.lt.u32.totalorder %s3579_s25, %s4724_s18 }
  0xa8   : > { %p3582_p10 = pnand %p3580_p12, %p4725_p9 }
  0xaa   : > { %p3583_p11 = pneg %p3582_p10 }
  0xac   : > { %p3588_p5 = pnand %p3586_p0, %p3583_p11 }
  0xae   : > { %3591 = shalt.err (!%p3588_p5)
}
  0xaf   : > { %s3592_s21 = scalar_lea.vmem %s493_s11, 256  ;;  %p3600_p8 = scmp.lt.s32.totalorder %s493_s11, %s493_s11 }
  0xb0   : > { %p3593_p3 = scmp.ne.s32.totalorder %s493_s11, %s3592_s21  ;;  %p3601_p1 = scmp.lt.s32.totalorder %s3592_s21, %s3592_s21 }
  0xb2   : > { %p3595_p4 = pnand %p3593_p3, %p4725_p9  ;;  %p3602_p7 = por %p3601_p1, %p3600_p8 }
  0xb4   : > { %p3596_p6 = pneg %p3595_p4 }
  0xb6   : > { %p3603_p13 = pnand %p3602_p7, %p3596_p6 }
  0xb8   : > { %3606 = shalt.err (!%p3603_p13)
}
  0xb9   : > { %p4726_p12 = scmp.ne.s32.totalorder %s4709_s1, 0  ;;  %s4727_s8 = smov 8  }
  0xba   : > { %s4728_s9 = smov 128   ;;  %s3816_s16 = smov [#allocation8]  }
  0xbb   : > { %3192 = dma.hbm_to_vmem [thread:$0]  (!%p4726_p12), %s4724_s18, 256, %s493_s11, [#allocation4], %s4728_s9, %s4728_s9, %s4727_s8  }
  0xbc   : > { %s518_s30 = sshll.u32 %s3816_s16, 4  ;;  %s4729_s2 = sld [smem:[#allocation35_spill]]  ;;  %s519_s30 = int_to_ptr.vmem [resolvable:$true] %s518_s30 }
  0xc2   : > { %s3607_s5 = scalar_lea.hbm %s4729_s2, 128 }
  0xc3   : > { %p3608_p13 = scmp.ne.s32.totalorder %s4729_s2, %s3607_s5  ;;  %p3614_p0 = scmp.lt.u32.totalorder %s3607_s5, %s4729_s2 }
  0xc5   : > { %p3610_p10 = pnand %p3608_p13, %p4725_p9 }
  0xc7   : > { %p3611_p11 = pneg %p3610_p10 }
  0xc9   : > { %p3616_p5 = pnand %p3614_p0, %p3611_p11 }
  0xcb   : > { %3619 = shalt.err (!%p3616_p5)
}
  0xcc   : > { %s3620_s11 = scalar_lea.vmem %s519_s30, 128  ;;  %p3628_p8 = scmp.lt.s32.totalorder %s519_s30, %s519_s30 }
  0xcd   : > { %p3621_p3 = scmp.ne.s32.totalorder %s519_s30, %s3620_s11  ;;  %p3629_p1 = scmp.lt.s32.totalorder %s3620_s11, %s3620_s11 }
  0xcf   : > { %p3623_p4 = pnand %p3621_p3, %p4725_p9  ;;  %p3630_p7 = por %p3629_p1, %p3628_p8 }
  0xd1   : > { %p3624_p6 = pneg %p3623_p4 }
  0xd3   : > { %p3631_p2 = pnand %p3630_p7, %p3624_p6 }
  0xd5   : > { %3634 = shalt.err (!%p3631_p2)
}
  0xd6   : > { %s3817_s21 = smov 64   ;;  %s3818_s28 = smov 4  }
  0xd7   : > { %3198 = dma.hbm_to_vmem [thread:$0]  (!%p4726_p12), %s4729_s2, 128, %s519_s30, [#allocation7], %s3817_s21, %s3817_s21, %s3818_s28  }
  0xd8   : > { %s2838_s19 = sshll.u32 %s4038_s20, 6  ;;  %s3819_s24 = smov [#allocation11]  }
  0xd9   : > { %s542_s5 = sshll.u32 %s3819_s24, 4  ;;  %s2976_s3 = sshll.u32 %s3803_s27, 10  ;;  %s543_s5 = int_to_ptr.vmem [resolvable:$true] %s542_s5 }
  0xda   : > { %s3635_s10 = scalar_lea.hbm %s4643_s4, 256 }
  0xdb   : > { %p3636_p2 = scmp.ne.s32.totalorder %s4643_s4, %s3635_s10  ;;  %p3642_p11 = scmp.lt.u32.totalorder %s3635_s10, %s4643_s4 }
  0xdd   : > { %p3638_p13 = pnand %p3636_p2, %p4725_p9 }
  0xdf   : > { %p3639_p10 = pneg %p3638_p13 }
  0xe1   : > { %p3644_p0 = pnand %p3642_p11, %p3639_p10 }
  0xe3   : > { %3647 = shalt.err (!%p3644_p0)
}
  0xe4   : > { %s3648_s20 = scalar_lea.vmem %s543_s5, 256  ;;  %p3656_p6 = scmp.lt.s32.totalorder %s543_s5, %s543_s5 }
  0xe5   : > { %p3649_p5 = scmp.ne.s32.totalorder %s543_s5, %s3648_s20  ;;  %p3657_p8 = scmp.lt.s32.totalorder %s3648_s20, %s3648_s20 }
  0xe7   : > { %p3651_p3 = pnand %p3649_p5, %p4725_p9  ;;  %p3658_p1 = por %p3657_p8, %p3656_p6 }
  0xe9   : > { %p3652_p4 = pneg %p3651_p3 }
  0xeb   : > { %p3659_p7 = pnand %p3658_p1, %p3652_p4 }
  0xed   : > { %3662 = shalt.err (!%p3659_p7)
}
  0xee   : > { %3204 = dma.hbm_to_vmem [thread:$0]  (!%p4726_p12), %s4643_s4, 256, %s543_s5, [#allocation10], %s4728_s9, %s4728_s9, %s4727_s8  }
  0xef   : > { %s4203_s0 = scalar_lea.hbm %s4646_s7, %s2976_s3  ;;  %s588_s30 = scalar_lea.vmem [#allocation14], %s2838_s19 }
  0xf0   : > { %s595_s25 = sshll.u32 %s588_s30, 4  ;;  %s3663_s1 = scalar_lea.hbm %s4203_s0, 1024  ;;  %s4205_s25 = int_to_ptr.vmem [resolvable:$true] %s595_s25 }
  0xf1   : > { %p3664_p9 = scmp.ne.s32.totalorder %s4203_s0, %s3663_s1  ;;  %p4730_p2 = scmp.ne.s32.totalorder %s4720_s22, 0 }
  0xf2   : > { %s3668_s9 = scalar_lea.hbm %s4646_s7, 2048  ;;  %p3669_p12 = scmp.lt.u32.totalorder %s4203_s0, %s4646_s7 }
  0xf3   : > { %p3666_p13 = pnand %p3664_p9, %p4730_p2  ;;  %p3670_p11 = scmp.lt.u32.totalorder %s3668_s9, %s3663_s1 }
  0xf4   : > { %p3672_p5 = scmp.lt.u32.totalorder %s3663_s1, %s4203_s0 }
  0xf5   : > { %p3667_p10 = pneg %p3666_p13  ;;  %p3671_p0 = por %p3670_p11, %p3669_p12 }
  0xf7   : > { %p3673_p3 = por %p3672_p5, %p3671_p0 }
  0xf9   : > { %p3674_p4 = pnand %p3673_p3, %p3667_p10 }
  0xfb   : > { %3677 = shalt.err (!%p3674_p4)
}
  0xfc   : > { %s3678_s19 = scalar_lea.vmem %s4205_s25, 1024  ;;  %s3820_s3 = smov [#allocation14]  }
  0xfd   : > { %p3679_p6 = scmp.ne.s32.totalorder %s4205_s25, %s3678_s19  ;;  %s3683_s23 = sshll.u32 %s3820_s3, 4  ;;  %s3684_s23 = int_to_ptr.vmem [resolvable:$false] %s3683_s23 }
  0xfe   : > { %s3685_s12 = scalar_lea.vmem %s3684_s23, 2048  ;;  %p3686_p7 = scmp.lt.s32.totalorder %s4205_s25, %s3684_s23 }
  0xff   : > { %p3681_p8 = pnand %p3679_p6, %p4730_p2  ;;  %p3687_p9 = scmp.lt.s32.totalorder %s3685_s12, %s3678_s19 }
 0x101   : > { %p3682_p1 = pneg %p3681_p8  ;;  %p3688_p13 = por %p3687_p9, %p3686_p7 }
 0x103   : > { %p3689_p12 = pnand %p3688_p13, %p3682_p1 }
 0x105   : > { %3692 = shalt.err (!%p3689_p12)
}
 0x106   : > { %p4731_p10 = scmp.ne.s32.totalorder %s4718_s6, 0  ;;  %s3693_s10 = scalar_lea.hbm %s4129_s26, 4096 }
 0x107   : > { %p3694_p11 = scmp.ne.s32.totalorder %s4129_s26, %s3693_s10  ;;  %s3698_s27 = scalar_lea.hbm %s4652_s13, 8192 }
 0x108   : > { %3211 = dma.hbm_to_vmem [thread:$0]  (!%p4731_p10), %s4203_s0, 1024, %s4205_s25, %s4055_s17, %s3817_s21, %s3817_s21, %s3818_s28  }
 0x109   : > { %p3696_p0 = pnand %p3694_p11, %p4730_p2  ;;  %p3699_p3 = scmp.lt.u32.totalorder %s4129_s26, %s4652_s13 }
 0x10a   : > { %p3700_p4 = scmp.lt.u32.totalorder %s3698_s27, %s3693_s10  ;;  %p3702_p8 = scmp.lt.u32.totalorder %s3693_s10, %s4129_s26 }
 0x10b   : > { %p3697_p5 = pneg %p3696_p0 }
 0x10c   : > { %p3701_p6 = por %p3700_p4, %p3699_p3 }
 0x10e   : > { %p3703_p1 = por %p3702_p8, %p3701_p6 }
 0x110   : > { %p3704_p7 = pnand %p3703_p1, %p3697_p5 }
 0x112   : > { %3707 = shalt.err (!%p3704_p7)
}
 0x113   : > { %s3708_s17 = scalar_lea.vmem %s4133_s15, 4096  ;;  %s3821_s18 = smov [#allocation17]  }
 0x114   : > { %p3709_p9 = scmp.ne.s32.totalorder %s4133_s15, %s3708_s17  ;;  %s3713_s0 = sshll.u32 %s3821_s18, 4  ;;  %s3714_s0 = int_to_ptr.vmem [resolvable:$false] %s3713_s0 }
 0x115   : > { %s3715_s30 = scalar_lea.vmem %s3714_s0, 8192  ;;  %p3716_p11 = scmp.lt.s32.totalorder %s4133_s15, %s3714_s0 }
 0x116   : > { %p3711_p13 = pnand %p3709_p9, %p4730_p2  ;;  %p3717_p0 = scmp.lt.s32.totalorder %s3715_s30, %s3708_s17 }
 0x118   : > { %p3712_p12 = pneg %p3711_p13  ;;  %p3718_p3 = por %p3717_p0, %p3716_p11 }
 0x11a   : > { %p3719_p4 = pnand %p3718_p3, %p3712_p12 }
 0x11c   : > { %3722 = shalt.err (!%p3719_p4)
}
 0x11d   : > { %s4732_s25 = sld [smem:[#allocation32_spill]]  ;;  %s4733_s22 = sld [smem:[#allocation28_spill]] }
 0x123   : > { %3217 = dma.hbm_to_vmem [thread:$0]  (!%p4731_p10), %s4129_s26, 4096, %s4133_s15, %s4732_s25, %s3817_s21, %s3817_s21, %s3818_s28  }
 0x124   : > { %p4734_p2 = scmp.ne.s32.totalorder %s4733_s22, 0 }
 0x125   : > { %s4735_s1 = sld [smem:[#allocation27_spill]] (!%p4734_p2) }
 0x126   : > { %692 = sbr.rel (%p4734_p2) target bundleno = 3139 (0xc43), region = 88 }
 0x12b   : > { %p4736_p5 = scmp.eq.s32.totalorder (!%p4734_p2), %s4735_s1, 0 }
 0x12d   : > { %3766 = dma.done.wait (%p4736_p5), [#allocation4], 256   ;;  %p4737_p6 = pmov %p4736_p5 }
 0x12e   : > { %p4738_p8 = pmov %p4736_p5 }
 0x12f   : > { %3768 = vsyncadd (%p4737_p6), [#allocation4], 4294967040 }
 0x130   : > { %3770 = dma.done.wait (%p4738_p8), [#allocation7], 384   ;;  %p4739_p1 = pmov %p4736_p5 }
 0x132   : > { %3772 = vsyncadd (%p4739_p1), [#allocation7], 4294966912  ;;  %p4740_p7 = pmov %p4739_p1 }
 0x133   : > { %p4741_p10 = pmov %p4739_p1 }
 0x134   : > { %3774 = dma.done.wait (%p4740_p7), [#allocation10], 272  }
 0x135   : > { %3776 = vsyncadd (%p4741_p10), [#allocation10], 4294967024  ;;  %s4742_s6 = sld [smem:[#allocation25_spill]]  ;;  %s4743_s26 = sld [smem:[#allocation31_spill]] }
 0x136   : > { %s714_s15 = sand.u32 1, %s4735_s1  }
 0x137   : > { %s715_s16 = scalar_lea.sflag [#allocation13], %s714_s15 }
 0x13b   : > { %s716_s21 = sand.u32 1, %s4742_s6   ;;  %p4744_p9 = scmp.ne.s32.totalorder %s4743_s26, 0 }
 0x13c   : > { %s3155_s28 = smul.u32 192, %s716_s21 }
 0x13e   : > { %s4273_s8 = scalar_lea.vmem [#allocation12], %s3155_s28 }
 0x13f   : > { %3778 = dma.done.wait (%p4744_p9), %s715_s16, 4096  }
 0x140   : > { %3780 = vsyncadd (%p4744_p9), %s715_s16, 4294963200  ;;  %s2853_s9 = sshll.u32 %s716_s21, 6  ;;  %s2854_s24 = sshll.u32 %s716_s21, 8 }
 0x141   : > { %s4279_s5 = scalar_lea.vmem [#allocation14], %s2853_s9  ;;  %s733_s19 = scalar_lea.sflag [#allocation16], %s714_s15 }
 0x142   : > { %s4281_s3 = scalar_lea.vmem [#allocation15], %s2854_s24 }
 0x143   : > { %3782 = dma.done.wait (%p4744_p9), %s733_s19, 8192  }
 0x144   : > { %3784 = vsyncadd (%p4744_p9), %s733_s19, 4294959104  ;;  %p832_p13 = scmp.lt.s32.totalorder %s4735_s1, 1  ;;  %s4745_s20 = sld [smem:[#allocation39_spill]] }
 0x145   : > { %s4748_s15 = sld [smem:[#allocation38_spill]]  ;;  %s4749_s19 = sld [smem:[#allocation43_spill]] }
 0x146   : > { %s4289_s23 = scalar_select %p832_p13, %s4735_s1, 1 }
 0x147   : > { %s4751_s18 = sld [smem:[#allocation45_spill]]  ;;  %s4752_s22 = sld [smem:[#allocation46_spill]] }
 0x148   : > { %s3156_s12 = smul.u32 3, %s4289_s23  ;;  %s2856_s28 = sshll.u32 %s4289_s23, 2 }
 0x149   : > { %p4753_p12 = scmp.ne.s32.totalorder %s4735_s1, 0 }
 0x14a   : > { %s838_s27 = scalar_lea.vmem %s4745_s20, %s4289_s23  ;;  %s4750_s20 = sld [smem:[#allocation44_spill]]  ;;  %v3287_v0 = vld [vmem:[#allocation8] sm:$0xff] (!%p4753_p12)   ;;  %v3822_v1 = vmov (!%p4753_p12), 0.0   ;;  %v864_v3 = vld [vmem:[#allocation3 + $0x8] sm:$0xff] (!%p4753_p12)  ;;  %vm3823_vm0 = vmmov (!%p4753_p12), 0   ;;  %vm881_vm1 = vcmask (!%p4753_p12), 130048  }
 0x14b   : > { %s4307_s21 = scalar_lea.vmem %s4748_s15, %s3156_s12  ;;  %s4313_s2 = scalar_lea.vmem %s4749_s19, %s2856_s28  ;;  %3059 = vmatprep.subr.bf16.mxu0 (!%p4753_p12), %v3822_v1  ;;  %v863_v2 = vld [vmem:[#allocation3] sm:$0xff] (!%p4753_p12)  ;;  %3061 = vmatprep.mubr.msk.bf16.mxu0 (!%p4753_p12), %vm3823_vm0, %v3822_v1  ;;  %v2858_v5 = vld [vmem:[#allocation9] ss:$0 sm:$0xff] (!%p4753_p12)  ;;  %v926_v7 = vld [vmem:[#allocation11] sm:$0xff] (!%p4753_p12) }
 0x14c   : > { %s4327_s12 = scalar_lea.vmem [#allocation17], %s2854_s24  ;;  %862 = sbr.rel (%p4753_p12) target bundleno = 554 (0x22a), region = 128  ;;  %3060 = vmatpush3.bf16.msra.mxu0 (!%p4753_p12), %v3287_v0  ;;  %v865_v4 = vpack.c.bf16 (!%p4753_p12), %v864_v3, %v863_v2  ;;  %v927_v11 = vld [vmem:[#allocation11 + $0x8] sm:$0xff] (!%p4753_p12) }
 0x14d   : > { %s854_s0 = scalar_lea.vmem %s4751_s18, %s4289_s23  ;;  %s857_s6 = scalar_lea.vmem %s4752_s22, %s4289_s23 }
 0x14f   : > { %3062 = vmatmul.mubr.msk.bf16.vlgmr.msra.gmra.mrb[0].mxu0 (!%p4753_p12), %vm881_vm1, %v865_v4 }
 0x150   : > { %s851_s29 = scalar_lea.vmem %s4750_s20, %s4289_s23 }
 0x222   : > { %v919_v6 = vpop.f32.mrb[0].mxu0 }
 0x223   : > { %v920_v8 = vadd.f32 %v2858_v5, %v919_v6  ;;  %v3063_v9 = vpop.f32.mrb[1].mxu0 }
 0x224   : > { %v922_v10 = vpop.f32.mrb[2].mxu0 }
 0x225   : > { %v928_v12 = vadd.f32 %v926_v7, %v920_v8  ;;  %v923_v13 = vadd.f32 %v2858_v5, %v922_v10  ;;  %v3064_v14 = vpop.f32.mrb[3].mxu0 }
 0x227   : > { %930 = vst [vmem:[#allocation2] sm:$0xff] %v928_v12  ;;  %v929_v15 = vadd.f32 %v927_v11, %v923_v13 }
 0x229   : > { %931 = vst [vmem:[#allocation2 + $0x8] sm:$0xff] %v929_v15 }
 0x22a PF: > { %v3303_v16 = vld [vmem:[%s4273_s8 + $0x4] ss:$12 sps:$4 sm:$0xff]   ;;  %v3305_v17 = vld [vmem:[%s4273_s8] ss:$12 sps:$4 sm:$0xff]   ;;  %v3824_v18 = vmov 0   ;;  %v3825_v19 = vmov 0.0   ;;  %v969_v45 = vlaneseq }
 0x22b   : > { %1144 = vmatprep.mubr.bf16.mxu0 %v3824_v18  ;;  %3065 = vmatprep.subr.bf16.mxu1 %v3825_v19  ;;  %v3306_v20 = vld [vmem:[%s4273_s8 + $0x1c] ss:$12 sps:$4 sm:$0xff]   ;;  %v3308_v21 = vld [vmem:[%s4273_s8 + $0x18] ss:$12 sps:$4 sm:$0xff]   ;;  %v3309_v22 = vld [vmem:[%s4273_s8 + $0x34] ss:$12 sps:$4 sm:$0xff]  }
 0x22c   : > { %1112 = vmatprep.subr.bf16.mxu0 %v3303_v16  ;;  %v3311_v23 = vld [vmem:[%s4273_s8 + $0x30] ss:$12 sps:$4 sm:$0xff]   ;;  %v3312_v24 = vld [vmem:[%s4273_s8 + $0x4c] ss:$12 sps:$4 sm:$0xff]   ;;  %v3314_v25 = vld [vmem:[%s4273_s8 + $0x48] ss:$12 sps:$4 sm:$0xff]  }
 0x22d   : > { %1113 = vmatpush1.bf16.msra.mxu0 %v3305_v17  ;;  %v3315_v26 = vld [vmem:[%s4273_s8 + $0x64] ss:$12 sps:$4 sm:$0xff]   ;;  %v3327_v27 = vld [vmem:[%s4273_s8 + $0x8] ss:$12 sps:$4 sm:$0xff]   ;;  %v3328_v28 = vld [vmem:[%s4273_s8 + $0x20] ss:$12 sps:$4 sm:$0xff]  }
 0x22e   : > { %1114 = vmatprep.subr.bf16.mxu0 %v3306_v20  ;;  %3066 = vmatpush3.bf16.msra.mxu1 %v3327_v27  ;;  %v3317_v29 = vld [vmem:[%s4273_s8 + $0x60] ss:$12 sps:$4 sm:$0xff]   ;;  %v3318_v30 = vld [vmem:[%s4273_s8 + $0x7c] ss:$12 sps:$4 sm:$0xff]   ;;  %v3320_v31 = vld [vmem:[%s4273_s8 + $0x78] ss:$12 sps:$4 sm:$0xff]  }
 0x22f   : > { %3067 = vmatprep.subr.bf16.mxu1 %v3825_v19  ;;  %v3321_v32 = vld [vmem:[%s4273_s8 + $0x94] ss:$12 sps:$4 sm:$0xff]   ;;  %v3329_v33 = vld [vmem:[%s4273_s8 + $0x38] ss:$12 sps:$4 sm:$0xff]   ;;  %v3330_v34 = vld [vmem:[%s4273_s8 + $0x50] ss:$12 sps:$4 sm:$0xff]  }
 0x230   : > { %v3323_v35 = vld [vmem:[%s4273_s8 + $0x90] ss:$12 sps:$4 sm:$0xff]   ;;  %v3324_v36 = vld [vmem:[%s4273_s8 + $0xac] ss:$12 sps:$4 sm:$0xff]   ;;  %v3331_v37 = vld [vmem:[%s4273_s8 + $0x68] ss:$12 sps:$4 sm:$0xff]  }
 0x231   : > { %1115 = vmatpush1.bf16.msra.mxu0 %v3308_v21  ;;  %v3326_v38 = vld [vmem:[%s4273_s8 + $0xa8] ss:$12 sps:$4 sm:$0xff]   ;;  %v4359_v40 = vld [vmem:[#allocation2 + $0x8] sm:$0xff]  ;;  %vm3826_vm2 = vmmov 0   ;;  %v4378_v46 = vshrl.u32 %v969_v45, 7  ;;  %vm1225_vm3 = vcmask 261120  }
 0x232   : > { %1116 = vmatprep.subr.bf16.mxu0 %v3309_v22  ;;  %3068 = vmatpush3.bf16.msra.mxu1 %v3328_v28  ;;  %v4357_v39 = vld [vmem:[#allocation2] sm:$0xff]  ;;  %v3332_v41 = vld [vmem:[%s4273_s8 + $0x80] ss:$12 sps:$4 sm:$0xff]   ;;  %s3827_s1 = smov 64   ;;  %s3829_s24 = smov 32   ;;  %vm1414_vm4 = vcmask 130048  }
 0x233   : > { %3069 = vmatprep.subr.bf16.mxu1 %v3825_v19  ;;  %v934_v42 = vpack.c.bf16 %v4359_v40, %v4357_v39  ;;  %v3333_v43 = vld [vmem:[%s4273_s8 + $0x98] ss:$12 sps:$4 sm:$0xff]   ;;  %v3334_v44 = vld [vmem:[%s4273_s8 + $0xb0] ss:$12 sps:$4 sm:$0xff]   ;;  %3081 = vmatprep.mubr.msk.bf16.mxu1 %vm3826_vm2, %v3825_v19  ;;  %v971_v47 = vsub.s32 0, %v4378_v46  ;;  %v975_v49 = vsub.s32 1, %v4378_v46 }
 0x234   : > { %v967_v48 = vld [vmem:[%s4307_s21] sm:$0x7]  ;;  %s3828_s8 = smov 96   ;;  %v979_v63 = vsub.s32 2, %v4378_v46  ;;  %v1224_v21 = vld [vmem:[#allocation6 + $0x8] sm:$0xff]  ;;  %vm1709_vm5 = vcmask 523264  }
 0x235   : > { %1117 = vmatpush1.bf16.msra.mxu0 %v3311_v23  ;;  %v972_v50 = vrot.slane %v967_v48, %v971_v47  ;;  %v976_v52 = vrot.slane %v967_v48, %v975_v49  ;;  %v1223_v17 = vld [vmem:[#allocation6] sm:$0xff]  ;;  %vm1712_vm6 = vcmask 785408   ;;  %s4755_s26 = sld [smem:[#allocation40_spill]]  ;;  %s4757_s16 = sld [smem:[#allocation41_spill]] }
 0x236   : > { %1118 = vmatprep.subr.bf16.mxu0 %v3312_v24  ;;  %3070 = vmatpush3.bf16.msra.mxu1 %v3329_v33  ;;  %v980_v0 = vrot.slane %v967_v48, %v979_v63  ;;  %s4762_s25 = sld [smem:[#allocation27_spill]] }
 0x237   : > { %3071 = vmatprep.subr.bf16.mxu1 %v3825_v19 }
 0x239   : > { %1119 = vmatpush1.bf16.msra.mxu0 %v3314_v25 }
 0x23a   : > { %1120 = vmatprep.subr.bf16.mxu0 %v3315_v26  ;;  %3072 = vmatpush3.bf16.msra.mxu1 %v3330_v34 }
 0x23b   : > { %3073 = vmatprep.subr.bf16.mxu1 %v3825_v19  ;;  %s4756_s15 = scalar_lea.vmem %s4755_s26, %s4289_s23  ;;  %s4758_s9 = scalar_lea.vmem %s4757_s16, %s4289_s23 }
 0x23c   : > { %p2971_p11 = scmp.ne.s32.totalorder %s4762_s25, 1 }
 0x23d   : > { %1121 = vmatpush1.bf16.msra.mxu0 %v3317_v29 }
 0x23e   : > { %1122 = vmatprep.subr.bf16.mxu0 %v3318_v30  ;;  %3074 = vmatpush3.bf16.msra.mxu1 %v3331_v37 }
 0x23f   : > { %3075 = vmatprep.subr.bf16.mxu1 %v3825_v19 }
 0x241   : > { %1123 = vmatpush1.bf16.msra.mxu0 %v3320_v31 }
 0x242   : > { %1124 = vmatprep.subr.bf16.mxu0 %v3321_v32  ;;  %3076 = vmatpush3.bf16.msra.mxu1 %v3332_v41 }
 0x243   : > { %3077 = vmatprep.subr.bf16.mxu1 %v3825_v19 }
 0x245   : > { %1125 = vmatpush1.bf16.msra.mxu0 %v3323_v35 }
 0x246   : > { %1126 = vmatprep.subr.bf16.mxu0 %v3324_v36  ;;  %3078 = vmatpush3.bf16.msra.mxu1 %v3333_v43 }
 0x247   : > { %3079 = vmatprep.subr.bf16.mxu1 %v3825_v19 }
 0x249   : > { %1127 = vmatpush1.bf16.msra.mxu0 %v3326_v38 }
 0x24a   : > { %3109 = vmatprep.subr.bf16.mxu0 %v3825_v19  ;;  %3080 = vmatpush3.bf16.msra.mxu1 %v3334_v44 }
 0x24b   : > { %3085 = vmatprep.subr.bf16.mxu1 %v3825_v19 }
 0x24c   : > { %1145 = vmatmul.mubr.bf16.vlgmr.msra.gmra.mrb[0].mxu0 %v934_v42 }
 0x24d   : > { %3111 = vmatprep.mubr.msk.bf16.mxu0 %vm3826_vm2, %v3825_v19  ;;  %3082 = vmatmul.mubr.bf16.vlgmr.msra.gmra.mrb[0].mxu1 %v934_v42 }
 0x24e   : > { %3087 = vmatprep.mubr.msk.bf16.mxu1 %vm3826_vm2, %v3825_v19 }
 0x31f   : > { %v1146_v51 = vpop.f32.mrb[0].mxu0 }
 0x320   : > { %v1148_v53 = vpop.f32.mrb[1].mxu0  ;;  %v1147_v55 = vadd.f32 %v1146_v51, %v972_v50  ;;  %v1189_v1 = vpop.f32.mrb[0].mxu1 }
 0x321   : > { %v1150_v54 = vpop.f32.mrb[2].mxu0  ;;  %v1149_v58 = vadd.f32 %v1148_v53, %v976_v52  ;;  %v1190_v2 = vadd.f32 %v1189_v1, %v980_v0  ;;  %v3083_v3 = vpop.f32.mrb[1].mxu1 }
 0x322   : > { %v1151_v56 = vadd.f32 %v1150_v54, %v972_v50  ;;  %v1152_v57 = vpop.f32.mrb[3].mxu0  ;;  %v1192_v4 = vpop.f32.mrb[2].mxu1 }
 0x323   : > { %v1153_v59 = vadd.f32 %v1152_v57, %v976_v52  ;;  %v1193_v5 = vadd.f32 %v1192_v4, %v980_v0  ;;  %v3084_v6 = vpop.f32.mrb[3].mxu1 }
 0x324   : > { %v1196_v60 = vpack.c.bf16 %v1151_v56, %v1147_v55 }
 0x325   : > { %v1197_v61 = vpack.c.bf16 %v1153_v59, %v1149_v58  ;;  %v4401_v7 = vpack.c.bf16 %v1193_v5, %v1190_v2 }
 0x327   : > { %1209 = vrot.lane.b32.xlu1 %v1197_v61, %s3827_s1  ;;  %1207 = vrot.lane.b32.xlu0 %v1197_v61, %s3828_s8  ;;  %v1230_v62 = vsel %vm1225_vm3, %v1197_v61, 0 }
 0x328   : > { %3086 = vmatpush3.bf16.xpose.msra.mxu1 %v1230_v62  ;;  %3110 = vmatpush3.bf16.msra.mxu0 %v4401_v7 }
 0x329   : > { %3091 = vmatprep.subr.bf16.mxu1 %v3825_v19  ;;  %3121 = vmatprep.subr.bf16.mxu0 %v3825_v19 }
 0x32b   : > { %1202 = vrot.lane.b32.xlu1 %v1196_v60, %s3827_s1  ;;  %1200 = vrot.lane.b32.xlu0 %v1196_v60, %s3828_s8 }
 0x32f   : > { %1204 = vrot.lane.b32.xlu1 %v1196_v60, %s3829_s24  ;;  %1211 = vrot.lane.b32.xlu0 %v1197_v61, %s3829_s24 }
 0x330   : > { %3088 = vmatmul.mubr.msk.bf16.vlgmr.msra.gmra.mrb[4].mxu1 %vm1225_vm3, %v1196_v60 }
 0x331   : > { %3093 = vmatprep.mubr.msk.bf16.mxu1 %vm3826_vm2, %v3825_v19 }
 0x399   : > { %v1208_v8 = vpop.permute.xlu0 %1207  ;;  %v1210_v10 = vpop.permute.xlu1 %1209 }
 0x39a   : > { %v1277_v9 = vsel %vm1225_vm3, %v1208_v8, 0  ;;  %v1324_v12 = vsel %vm1225_vm3, %v1210_v10, 0 }
 0x39b   : > { %3092 = vmatpush3.bf16.xpose.msra.mxu1 %v1277_v9 }
 0x39c   : > { %3097 = vmatprep.subr.bf16.mxu1 %v3825_v19 }
 0x39d   : > { %v1201_v11 = vpop.permute.xlu0 %1200  ;;  %v1203_v14 = vpop.permute.xlu1 %1202 }
 0x3a1   : > { %v1212_v13 = vpop.permute.xlu0 %1211  ;;  %v1205_v16 = vpop.permute.xlu1 %1204 }
 0x3a2   : > { %3094 = vmatmul.mubr.msk.bf16.vlgmr.msra.gmra.mrb[8].mxu1 %vm1225_vm3, %v1201_v11  ;;  %v1371_v15 = vsel %vm1225_vm3, %v1212_v13, 0 }
 0x3a3   : > { %3098 = vmatpush3.bf16.xpose.msra.mxu1 %v1324_v12  ;;  %3099 = vmatprep.mubr.msk.bf16.mxu1 %vm3826_vm2, %v3825_v19 }
 0x3a4   : > { %3103 = vmatprep.subr.bf16.mxu1 %v3825_v19 }
 0x3aa   : > { %3100 = vmatmul.mubr.msk.bf16.vlgmr.msra.gmra.mrb[12].mxu1 %vm1225_vm3, %v1203_v14 }
 0x3ab   : > { %3104 = vmatpush3.bf16.xpose.msra.mxu1 %v1371_v15  ;;  %3105 = vmatprep.mubr.msk.bf16.mxu1 %vm3826_vm2, %v3825_v19 }
 0x3ac   : > { %3115 = vmatprep.subr.bf16.mxu1 %v3825_v19 }
 0x3b2   : > { %3106 = vmatmul.mubr.msk.bf16.vlgmr.msra.gmra.mrb[16].mxu1 %vm1225_vm3, %v1205_v16 }
 0x3b3   : > { %3117 = vmatprep.mubr.msk.bf16.mxu1 %vm3826_vm2, %v3825_v19 }
 0x403   : > { %v1266_v20 = vpop.f32.mrb[4].mxu1 }
 0x404   : > { %v1267_v22 = vadd.f32 %v1266_v20, %v1223_v17  ;;  %v3089_v23 = vpop.f32.mrb[5].mxu1 }
 0x405   : > { %v1269_v24 = vpop.f32.mrb[6].mxu1 }
 0x406   : > { %v1270_v25 = vadd.f32 %v1269_v24, %v1224_v21  ;;  %v3090_v26 = vpop.f32.mrb[7].mxu1  ;;  %v1415_v27 = vsel %vm1414_vm4, %v1267_v22, -inf }
 0x407   : > { %1416 = vmax.xlane.f32.xlu0 %v1415_v27 }
 0x408   : > { %v1418_v28 = vsel %vm1414_vm4, %v1270_v25, -inf }
 0x409   : > { %1419 = vmax.xlane.f32.xlu1 %v1418_v28 }
 0x475   : > { %v1313_v29 = vpop.f32.mrb[8].mxu1 }
 0x476   : > { %v1314_v30 = vadd.f32 %v1313_v29, %v1223_v17  ;;  %v3095_v31 = vpop.f32.mrb[9].mxu1 }
 0x477   : > { %v1316_v32 = vpop.f32.mrb[10].mxu1 }
 0x478   : > { %v1317_v33 = vadd.f32 %v1316_v32, %v1224_v21  ;;  %v3096_v34 = vpop.f32.mrb[11].mxu1  ;;  %v1421_v35 = vsel %vm1414_vm4, %v1314_v30, -inf }
 0x479   : > { %1422 = vmax.xlane.f32.xlu0 %v1421_v35 }
 0x47a   : > { %v1424_v36 = vsel %vm1414_vm4, %v1317_v33, -inf }
 0x47d   : > { %1425 = vmax.xlane.f32.xlu0 %v1424_v36  ;;  %v1360_v37 = vpop.f32.mrb[12].mxu1 }
 0x47e   : > { %v1361_v38 = vadd.f32 %v1360_v37, %v1223_v17  ;;  %v3101_v41 = vpop.f32.mrb[13].mxu1 }
 0x47f   : > { %v1363_v42 = vpop.f32.mrb[14].mxu1 }
 0x480   : > { %v1364_v43 = vadd.f32 %v1363_v42, %v1224_v21  ;;  %v3102_v44 = vpop.f32.mrb[15].mxu1  ;;  %v1427_v45 = vsel %vm1414_vm4, %v1361_v38, -inf }
 0x481   : > { %1428 = vmax.xlane.f32.xlu1 %v1427_v45 }
 0x482   : > { %v1430_v48 = vsel %vm1414_vm4, %v1364_v43, -inf }
 0x483   : > { %1431 = vmax.xlane.f32.xlu0 %v1430_v48 }
 0x485   : > { %v1407_v50 = vpop.f32.mrb[16].mxu1 }
 0x486   : > { %v1408_v51 = vadd.f32 %v1407_v50, %v1223_v17  ;;  %v3107_v52 = vpop.f32.mrb[17].mxu1 }
 0x487   : > { %v1410_v53 = vpop.f32.mrb[18].mxu1 }
 0x488   : > { %v1411_v54 = vadd.f32 %v1410_v53, %v1224_v21  ;;  %v3108_v55 = vpop.f32.mrb[19].mxu1  ;;  %v1433_v56 = vsel %vm1414_vm4, %v1408_v51, -inf }
 0x489   : > { %1434 = vmax.xlane.f32.xlu1 %v1433_v56 }
 0x48a   : > { %v1436_v57 = vsel %vm1414_vm4, %v1411_v54, -inf }
 0x48b   : > { %1437 = vmax.xlane.f32.xlu0 %v1436_v57 }
 0x494   : > { %v1417_v62 = vpop.xlane.xlu0 %1416 }
 0x495   : > { %v1439_v1 = vsub.f32 %v1267_v22, %v1417_v62 }
 0x496   : > { %v1420_v58 = vpop.xlane.xlu1 %1419 }
 0x497   : > { %v1440_v59 = vsub.f32 %v1270_v25, %v1420_v58  ;;  %v1447_v2 = vmul.f32 1.442695, %v1439_v1 }
 0x499   : > { %v1449_v60 = vmul.f32 1.442695, %v1440_v59 }
 0x49a   : > { %1214 = vrot.lane.b32.xlu1 %v4401_v7, %s3828_s8 }
 0x49b   : > { %3423 = vpow2.f32 %v1449_v60 }
 0x49c   : > { %3425 = vpow2.f32 %v1447_v2 }
 0x4a5   : > { %v4430_v61 = vpop.eup %3423 }
 0x4a6   : > { %v1466_v0 = vsel %vm1414_vm4, %v4430_v61, 0.0  ;;  %v3426_v3 = vpop.eup %3425 }
 0x4a7   : > { %1467 = vadd.xlane.f32.xlu0 %v1466_v0  ;;  %v1463_v4 = vsel %vm1414_vm4, %v3426_v3, 0.0 }
 0x4be   : > { %1464 = vadd.xlane.f32.xlu1 %v1463_v4 }
 0x506   : > { %v1423_v5 = vpop.xlane.xlu0 %1422 }
 0x507   : > { %v1441_v6 = vsub.f32 %v1314_v30, %v1423_v5 }
 0x509   : > { %v1451_v8 = vmul.f32 1.442695, %v1441_v6 }
 0x50a   : > { %v1426_v9 = vpop.xlane.xlu0 %1425 }
 0x50b   : > { %3427 = vpow2.f32 %v1451_v8  ;;  %v1442_v10 = vsub.f32 %v1317_v33, %v1426_v9 }
 0x50d   : > { %v1453_v11 = vmul.f32 1.442695, %v1442_v10 }
 0x50e   : > { %v1429_v12 = vpop.xlane.xlu1 %1428 }
 0x50f   : > { %3429 = vpow2.f32 %v1453_v11  ;;  %v1443_v13 = vsub.f32 %v1361_v38, %v1429_v12  ;;  %v3335_v11 = vld [vmem:[%s4279_s5] sm:$0xff]   ;;  %v3336_v12 = vld [vmem:[%s4279_s5 + $0x8] sm:$0xff]  }
 0x510   : > { %v1432_v14 = vpop.xlane.xlu0 %1431 }
 0x511   : > { %v1455_v15 = vmul.f32 1.442695, %v1443_v13  ;;  %v1444_v16 = vsub.f32 %v1364_v43, %v1432_v14  ;;  %v3337_v13 = vld [vmem:[%s4279_s5 + $0x10] sm:$0xff]  }
 0x513   : > { %3431 = vpow2.f32 %v1455_v15  ;;  %v1457_v17 = vmul.f32 1.442695, %v1444_v16 }
 0x515   : > { %v3428_v20 = vpop.eup %3427  ;;  %3433 = vpow2.f32 %v1457_v17 }
 0x516   : > { %v1435_v21 = vpop.xlane.xlu1 %1434  ;;  %v1469_v22 = vsel %vm1414_vm4, %v3428_v20, 0.0 }
 0x517   : > { %v1445_v23 = vsub.f32 %v1408_v51, %v1435_v21  ;;  %1470 = vadd.xlane.f32.xlu1 %v1469_v22  ;;  %v3339_v21 = vld [vmem:[%s4279_s5 + $0x20] sm:$0xff]   ;;  %v3340_v22 = vld [vmem:[%s4279_s5 + $0x28] sm:$0xff]  }
 0x518   : > { %v1438_v24 = vpop.xlane.xlu0 %1437 }
 0x519   : > { %v3430_v25 = vpop.eup %3429  ;;  %v1459_v26 = vmul.f32 1.442695, %v1445_v23  ;;  %v1446_v27 = vsub.f32 %v1411_v54, %v1438_v24 }
 0x51a   : > { %v1215_v28 = vpop.permute.xlu1 %1214  ;;  %v1472_v29 = vsel %vm1414_vm4, %v3430_v25, 0.0 }
 0x51b   : > { %3435 = vpow2.f32 %v1459_v26  ;;  %v1461_v30 = vmul.f32 1.442695, %v1446_v27  ;;  %3116 = vmatpush3.bf16.msra.mxu1 %v1215_v28  ;;  %1473 = vadd.xlane.f32.xlu0 %v1472_v29 }
 0x51c   : > { %3127 = vmatprep.subr.bf16.mxu1 %v3825_v19 }
 0x51d   : > { %v3432_v31 = vpop.eup %3431  ;;  %3437 = vpow2.f32 %v1461_v30 }
 0x51e   : > { %v1475_v32 = vsel %vm1414_vm4, %v3432_v31, 0.0 }
 0x51f   : > { %v3434_v33 = vpop.eup %3433  ;;  %1476 = vadd.xlane.f32.xlu1 %v1475_v32 }
 0x520   : > { %v1478_v34 = vsel %vm1414_vm4, %v3434_v33, 0.0 }
 0x521   : > { %1479 = vadd.xlane.f32.xlu0 %v1478_v34 }
 0x525   : > { %v3436_v35 = vpop.eup %3435 }
 0x526   : > { %v1481_v36 = vsel %vm1414_vm4, %v3436_v35, 0.0 }
 0x527   : > { %v3438_v37 = vpop.eup %3437  ;;  %1482 = vadd.xlane.f32.xlu1 %v1481_v36 }
 0x528   : > { %v1484_v38 = vsel %vm1414_vm4, %v3438_v37, 0.0 }
 0x529   : > { %1485 = vadd.xlane.f32.xlu0 %v1484_v38 }
 0x534   : > { %v1468_v41 = vpop.xlane.xlu0 %1467 }
 0x535   : > { %3439 = vrcp.f32 %v1468_v41 }
 0x538   : > { %1220 = vrot.lane.b32.xlu1 %v4401_v7, %s3829_s24 }
 0x53f   : > { %1217 = vrot.lane.b32.xlu0 %v4401_v7, %s3827_s1  ;;  %v3440_v43 = vpop.eup %3439 }
 0x540   : > { %v1496_v45 = vmul.f32 %v3440_v43, %v4430_v61 }
 0x54b   : > { %v1465_v42 = vpop.xlane.xlu1 %1464 }
 0x54c   : > { %3441 = vrcp.f32 %v1465_v42 }
 0x556   : > { %v3442_v44 = vpop.eup %3441 }
 0x557   : > { %v1495_v48 = vmul.f32 %v3442_v44, %v3426_v3 }
 0x559   : > { %v1503_v50 = vpack.c.bf16 %v1496_v45, %v1495_v48 }
 0x55b   : > { %3112 = vmatmul.mubr.msk.bf16.vlgmr.msra.gmra.mrb[4].mxu0 %vm1414_vm4, %v1503_v50 }
 0x55c   : > { %3123 = vmatprep.mubr.msk.bf16.mxu0 %vm3826_vm2, %v3825_v19 }
 0x5a4   : > { %v1471_v51 = vpop.xlane.xlu1 %1470 }
 0x5a5   : > { %3443 = vrcp.f32 %v1471_v51 }
 0x5a8   : > { %v1474_v52 = vpop.xlane.xlu0 %1473 }
 0x5a9   : > { %3445 = vrcp.f32 %v1474_v52 }
 0x5ac   : > { %v1477_v7 = vpop.xlane.xlu1 %1476 }
 0x5ad   : > { %3447 = vrcp.f32 %v1477_v7 }
 0x5ae   : > { %v1480_v53 = vpop.xlane.xlu0 %1479 }
 0x5af   : > { %3449 = vrcp.f32 %v1480_v53  ;;  %v3444_v54 = vpop.eup %3443 }
 0x5b0   : > { %v1497_v56 = vmul.f32 %v3444_v54, %v3428_v20  ;;  %v3338_v20 = vld [vmem:[%s4279_s5 + $0x18] sm:$0xff]  }
 0x5b3   : > { %v3446_v55 = vpop.eup %3445 }
 0x5b4   : > { %v1498_v57 = vmul.f32 %v3446_v55, %v3430_v25  ;;  %v1483_v58 = vpop.xlane.xlu1 %1482  ;;  %v3341_v25 = vld [vmem:[%s4279_s5 + $0x30] sm:$0xff]  }
 0x5b5   : > { %3451 = vrcp.f32 %v1483_v58 }
 0x5b6   : > { %v1486_v59 = vpop.xlane.xlu0 %1485  ;;  %v1504_v60 = vpack.c.bf16 %v1498_v57, %v1497_v56 }
 0x5b7   : > { %v3448_v61 = vpop.eup %3447  ;;  %3453 = vrcp.f32 %v1486_v59  ;;  %v2893_v59 = vld [vmem:[%s838_s27] ss:$0 sm:$0xff] }
 0x5b8   : > { %v1221_v62 = vpop.permute.xlu1 %1220  ;;  %3118 = vmatmul.mubr.msk.bf16.vlgmr.msra.gmra.mrb[20].mxu1 %vm1414_vm4, %v1504_v60  ;;  %v1499_v1 = vmul.f32 %v3448_v61, %v3432_v31  ;;  %v3342_v31 = vld [vmem:[%s4279_s5 + $0x38] sm:$0xff]  }
 0x5b9   : > { %v3450_v0 = vpop.eup %3449  ;;  %3128 = vmatpush3.bf16.msra.mxu1 %v1221_v62  ;;  %3129 = vmatprep.mubr.msk.bf16.mxu1 %vm3826_vm2, %v3825_v19 }
 0x5ba   : > { %v1500_v2 = vmul.f32 %v3450_v0, %v3434_v33  ;;  %v1218_v3 = vpop.permute.xlu0 %1217 }
 0x5bb   : > { %3122 = vmatpush3.bf16.msra.mxu0 %v1218_v3 }
 0x5bc   : > { %v1505_v4 = vpack.c.bf16 %v1500_v2, %v1499_v1  ;;  %3133 = vmatprep.subr.bf16.mxu0 %v3825_v19 }
 0x5be   : > { %3124 = vmatmul.mubr.msk.bf16.vlgmr.msra.gmra.mrb[8].mxu0 %vm1414_vm4, %v1505_v4  ;;  %v3343_v4 = vld [vmem:[%s4281_s3] ss:$16 sps:$4 sm:$0xff]  }
 0x5bf   : > { %v3452_v5 = vpop.eup %3451  ;;  %3149 = vmatprep.mubr.msk.bf16.mxu0 %vm3826_vm2, %v3825_v19  ;;  %3134 = vmatpush3.bf16.msra.mxu0 %v3335_v11  ;;  %v3349_v11 = vld [vmem:[%s4281_s3 + $0x20] ss:$16 sps:$4 sm:$0xff]  }
 0x5c0   : > { %v1501_v8 = vmul.f32 %v3452_v5, %v3436_v35  ;;  %3135 = vmatprep.subr.bf16.mxu0 %v3825_v19  ;;  %v3345_v5 = vld [vmem:[%s4281_s3 + $0x4] ss:$16 sps:$4 sm:$0xff]  }
 0x5c1   : > { %v3454_v6 = vpop.eup %3453  ;;  %2086 = vmatprep.subr.bf16.mxu1 %v3345_v5  ;;  %v3395_v5 = vld [vmem:[%s4327_s12 + $0x48] sm:$0xff]  }
 0x5c2   : > { %v1502_v9 = vmul.f32 %v3454_v6, %v3438_v37  ;;  %v3346_v6 = vld [vmem:[%s4281_s3 + $0x8] ss:$16 sps:$4 sm:$0xff]  }
 0x5c3   : > { %3136 = vmatpush3.bf16.msra.mxu0 %v3336_v12 }
 0x5c4   : > { %v1506_v10 = vpack.c.bf16 %v1502_v9, %v1501_v8  ;;  %3137 = vmatprep.subr.bf16.mxu0 %v3825_v19  ;;  %v3348_v8 = vld [vmem:[%s4281_s3 + $0xc] ss:$16 sps:$4 sm:$0xff]   ;;  %v3351_v9 = vld [vmem:[%s4281_s3 + $0x24] ss:$16 sps:$4 sm:$0xff]  }
 0x5c6   : > { %3130 = vmatmul.mubr.msk.bf16.vlgmr.msra.gmra.mrb[24].mxu1 %vm1414_vm4, %v1506_v10  ;;  %v3354_v10 = vld [vmem:[%s4281_s3 + $0x2c] ss:$16 sps:$4 sm:$0xff]  }
 0x5c7   : > { %2118 = vmatprep.mubr.bf16.mxu1 %v3824_v18  ;;  %3138 = vmatpush3.bf16.msra.mxu0 %v3337_v13 }
 0x5c8   : > { %3139 = vmatprep.subr.bf16.mxu0 %v3825_v19  ;;  %2087 = vmatpush1.bf16.msra.mxu1 %v3343_v4 }
 0x5c9   : > { %2088 = vmatprep.subr.bf16.mxu1 %v3351_v9  ;;  %v3398_v9 = vld [vmem:[%s4327_s12 + $0x88] sm:$0xff]  }
 0x5cb   : > { %3140 = vmatpush3.bf16.msra.mxu0 %v3338_v20 }
 0x5cc   : > { %3141 = vmatprep.subr.bf16.mxu0 %v3825_v19  ;;  %2089 = vmatpush1.bf16.msra.mxu1 %v3349_v11  ;;  %v3400_v11 = vld [vmem:[%s4327_s12 + $0xd0] sm:$0xff]  }
 0x5cf   : > { %3142 = vmatpush3.bf16.msra.mxu0 %v3339_v21  ;;  %v3357_v21 = vld [vmem:[%s4281_s3 + $0x44] ss:$16 sps:$4 sm:$0xff]  }
 0x5d0   : > { %3143 = vmatprep.subr.bf16.mxu0 %v3825_v19  ;;  %2090 = vmatprep.subr.bf16.mxu1 %v3357_v21  ;;  %v3410_v21 = vld [vmem:[%s4327_s12 + $0xa0] sm:$0xff]  }
 0x5d3   : > { %3144 = vmatpush3.bf16.msra.mxu0 %v3340_v22  ;;  %v3360_v22 = vld [vmem:[%s4281_s3 + $0x4c] ss:$16 sps:$4 sm:$0xff]  }
 0x5d4   : > { %3145 = vmatprep.subr.bf16.mxu0 %v3825_v19 }
 0x5d7   : > { %3146 = vmatpush3.bf16.msra.mxu0 %v3341_v25  ;;  %v3363_v25 = vld [vmem:[%s4281_s3 + $0x64] ss:$16 sps:$4 sm:$0xff]  }
 0x5d8   : > { %3147 = vmatprep.subr.bf16.mxu0 %v3825_v19 }
 0x5db   : > { %3148 = vmatpush3.bf16.msra.mxu0 %v3342_v31  ;;  %v3367_v31 = vld [vmem:[%s4281_s3 + $0x80] ss:$16 sps:$4 sm:$0xff]  }
 0x5dc   : > { %2129 = vmatprep.subr.bf16.mxu0 %v3348_v8  ;;  %v3397_v8 = vld [vmem:[%s4327_s12 + $0x8] sm:$0xff]  }
 0x62e   : > { %v1544_v14 = vpop.f32.mrb[4].mxu0 }
 0x62f   : > { %v3113_v15 = vpop.f32.mrb[5].mxu0 }
 0x630   : > { %v1547_v16 = vpop.f32.mrb[6].mxu0 }
 0x631   : > { %v3114_v17 = vpop.f32.mrb[7].mxu0 }
 0x68b   : > { %v1588_v23 = vpop.f32.mrb[20].mxu1 }
 0x68c   : > { %v3119_v24 = vpop.f32.mrb[21].mxu1 }
 0x68d   : > { %v1591_v26 = vpop.f32.mrb[22].mxu1  ;;  %v3358_v24 = vld [vmem:[%s4281_s3 + $0x48] ss:$16 sps:$4 sm:$0xff]  }
 0x68e   : > { %v3288_v27 = vpack.i.bf16 %v1591_v26, %v1588_v23  ;;  %v3120_v28 = vpop.f32.mrb[23].mxu1  ;;  %v3355_v23 = vld [vmem:[%s4281_s3 + $0x40] ss:$16 sps:$4 sm:$0xff]   ;;  %v3366_v26 = vld [vmem:[%s4281_s3 + $0x6c] ss:$16 sps:$4 sm:$0xff]  }
 0x68f   : > { %2091 = vmatpush1.bf16.msra.mxu1 %v3355_v23  ;;  %v3364_v28 = vld [vmem:[%s4281_s3 + $0x68] ss:$16 sps:$4 sm:$0xff]  }
 0x690   : > { %3289 = vrot.lane.b32.xlu1 %v3288_v27, %s3829_s24  ;;  %v3361_v27 = vld [vmem:[%s4281_s3 + $0x60] ss:$16 sps:$4 sm:$0xff]   ;;  %2092 = vmatprep.subr.bf16.mxu1 %v3363_v25  ;;  %v3412_v23 = vld [vmem:[%s4327_s12 + $0xe8] sm:$0xff]  }
 0x691   : > { %v1632_v29 = vpop.f32.mrb[8].mxu0  ;;  %v3414_v25 = vld [vmem:[%s4327_s12 + $0xa8] sm:$0xff]  }
 0x692   : > { %v3125_v30 = vpop.f32.mrb[9].mxu0 }
 0x693   : > { %v1635_v32 = vpop.f32.mrb[10].mxu0  ;;  %2093 = vmatpush1.bf16.msra.mxu1 %v3361_v27  ;;  %v3372_v30 = vld [vmem:[%s4281_s3 + $0x8c] ss:$16 sps:$4 sm:$0xff]   ;;  %v3416_v27 = vld [vmem:[%s4327_s12 + $0xf0] sm:$0xff]  }
 0x694   : > { %v3293_v33 = vpack.i.bf16 %v1635_v32, %v1632_v29  ;;  %v3126_v34 = vpop.f32.mrb[11].mxu0  ;;  %v3369_v29 = vld [vmem:[%s4281_s3 + $0x84] ss:$16 sps:$4 sm:$0xff]   ;;  %v3370_v32 = vld [vmem:[%s4281_s3 + $0x88] ss:$16 sps:$4 sm:$0xff]  }
 0x695   : > { %2094 = vmatprep.subr.bf16.mxu1 %v3369_v29  ;;  %v3378_v34 = vld [vmem:[%s4281_s3 + $0xac] ss:$16 sps:$4 sm:$0xff]   ;;  %v3418_v29 = vld [vmem:[%s4327_s12 + $0xb0] sm:$0xff]  }
 0x696   : > { %3294 = vrot.lane.b32.xlu0 %v3293_v33, %s3827_s1  ;;  %v3375_v33 = vld [vmem:[%s4281_s3 + $0xa4] ss:$16 sps:$4 sm:$0xff]  }
 0x697   : > { %2095 = vmatpush1.bf16.msra.mxu1 %v3367_v31  ;;  %v3420_v31 = vld [vmem:[%s4327_s12 + $0xf8] sm:$0xff]  }
 0x698   : > { %2096 = vmatprep.subr.bf16.mxu1 %v3375_v33  ;;  %v3422_v33 = vld [vmem:[%s4327_s12 + $0xb8] sm:$0xff]  }
 0x699   : > { %v1676_v35 = vpop.f32.mrb[24].mxu1 }
 0x69a   : > { %v3131_v36 = vpop.f32.mrb[25].mxu1 }
 0x69b   : > { %v1679_v37 = vpop.f32.mrb[26].mxu1  ;;  %v3376_v36 = vld [vmem:[%s4281_s3 + $0xa8] ss:$16 sps:$4 sm:$0xff]  }
 0x69c   : > { %v3298_v38 = vpack.i.bf16 %v1679_v37, %v1676_v35  ;;  %v3132_v41 = vpop.f32.mrb[27].mxu1  ;;  %v3373_v35 = vld [vmem:[%s4281_s3 + $0xa0] ss:$16 sps:$4 sm:$0xff]   ;;  %v3381_v37 = vld [vmem:[%s4281_s3 + $0xc4] ss:$16 sps:$4 sm:$0xff]  }
 0x69d   : > { %2097 = vmatpush1.bf16.msra.mxu1 %v3373_v35  ;;  %v3379_v41 = vld [vmem:[%s4281_s3 + $0xc0] ss:$16 sps:$4 sm:$0xff]   ;;  %v1920_v35 = vsub.s32 3, %v4378_v46 }
 0x69e   : > { %3299 = vrot.lane.b32.xlu1 %v3298_v38, %s3828_s8  ;;  %v3384_v38 = vld [vmem:[%s4281_s3 + $0xcc] ss:$16 sps:$4 sm:$0xff]   ;;  %2098 = vmatprep.subr.bf16.mxu1 %v3381_v37 }
 0x6a1   : > { %2099 = vmatpush1.bf16.msra.mxu1 %v3379_v41 }
 0x702   : > { %v3290_v42 = vpop.permute.xlu1 %3289 }
 0x703   : > { %v3292_v44 = vunpack.i.h.bf16 %v3290_v42  ;;  %v3291_v45 = vunpack.i.l.bf16 %v3290_v42  ;;  %v3382_v42 = vld [vmem:[%s4281_s3 + $0xc8] ss:$16 sps:$4 sm:$0xff]  }
 0x705   : > { %v1708_v51 = vsel %vm1225_vm3, %v1547_v16, %v3292_v44  ;;  %v1707_v52 = vsel %vm1225_vm3, %v1544_v14, %v3291_v45  ;;  %v3390_v44 = vld [vmem:[%s4281_s3 + $0xec] ss:$16 sps:$4 sm:$0xff]   ;;  %v3385_v45 = vld [vmem:[%s4281_s3 + $0xe0] ss:$16 sps:$4 sm:$0xff]  }
 0x708   : > { %v3295_v43 = vpop.permute.xlu0 %3294 }
 0x709   : > { %v3297_v19 = vunpack.i.h.bf16 %v3295_v43  ;;  %v3296_v48 = vunpack.i.l.bf16 %v3295_v43  ;;  %v3387_v43 = vld [vmem:[%s4281_s3 + $0xe4] ss:$16 sps:$4 sm:$0xff]  }
 0x70a   : > { %2100 = vmatprep.subr.bf16.mxu1 %v3387_v43 }
 0x70b   : > { %v1710_v54 = vsel %vm1709_vm5, %v1707_v52, %v3296_v48  ;;  %v1711_v55 = vsel %vm1709_vm5, %v1708_v51, %v3297_v19  ;;  %v3388_v19 = vld [vmem:[%s4281_s3 + $0xe8] ss:$16 sps:$4 sm:$0xff]   ;;  %2101 = vmatpush1.bf16.msra.mxu1 %v3385_v45  ;;  %v3391_v48 = vld [vmem:[%s4327_s12 + $0x40] sm:$0xff]  }
 0x70c   : > { %3015 = vmatprep.subr.bf16.mxu1 %v3391_v48 }
 0x710   : > { %v3300_v50 = vpop.permute.xlu1 %3299 }
 0x711   : > { %v3302_v7 = vunpack.i.h.bf16 %v3300_v50  ;;  %v3301_v53 = vunpack.i.l.bf16 %v3300_v50  ;;  %v3392_v50 = vld [vmem:[%s4327_s12 + $0xc0] sm:$0xff]  }
 0x713   : > { %v1714_v56 = vsel %vm1712_vm6, %v1711_v55, %v3302_v7  ;;  %v1713_v57 = vsel %vm1712_vm6, %v1710_v54, %v3301_v53 }
 0x714   : > { %v1715_v58 = vpack.c.bf16 %v1714_v56, %v1713_v57 }
 0x716   : > { %3150 = vmatmul.mubr.bf16.vlgmr.msra.gmra.mrb[12].mxu0 %v1715_v58  ;;  %v2902_v58 = vld [vmem:[%s4756_s15] ss:$0 sm:$0xff] }
 0x717   : > { %2161 = vmatprep.mubr.bf16.mxu0 %v3824_v18  ;;  %2130 = vmatpush1.bf16.msra.mxu0 %v3346_v6  ;;  %v3396_v6 = vld [vmem:[%s4327_s12 + $0xc8] sm:$0xff]  }
 0x718   : > { %2131 = vmatprep.subr.bf16.mxu0 %v3354_v10  ;;  %v3399_v10 = vld [vmem:[%s4327_s12 + $0x50] sm:$0xff]  }
 0x7e9   : > { %v1821_v60 = vpop.f32.mrb[12].mxu0 }
 0x7ea   : > { %v1822_v61 = vadd.f32 %v2893_v59, %v1821_v60  ;;  %v3151_v62 = vpop.f32.mrb[13].mxu0 }
 0x7eb   : > { %v1824_v0 = vpop.f32.mrb[14].mxu0  ;;  %v2903_v62 = vld [vmem:[%s4758_s9] ss:$0 sm:$0xff] }
 0x7ec   : > { %v1825_v1 = vadd.f32 %v2893_v59, %v1824_v0  ;;  %v3152_v2 = vpop.f32.mrb[15].mxu0  ;;  %v1828_v3 = vadd.f32 %v1822_v61, %v4357_v39  ;;  %v3352_v39 = vld [vmem:[%s4281_s3 + $0x28] ss:$16 sps:$4 sm:$0xff]  }
 0x7ed   : > { %2132 = vmatpush1.bf16.msra.mxu0 %v3352_v39  ;;  %v3401_v39 = vld [vmem:[%s4327_s12 + $0x10] sm:$0xff]  }
 0x7ee   : > { %1832 = vadd.xlane.f32.xlu0 %v1828_v3  ;;  %v1829_v18 = vadd.f32 %v1825_v1, %v4359_v40  ;;  %2133 = vmatprep.subr.bf16.mxu0 %v3360_v22  ;;  %v3411_v22 = vld [vmem:[%s4327_s12 + $0x68] sm:$0xff]  }
 0x7f0   : > { %1834 = vadd.xlane.f32.xlu1 %v1829_v18 }
 0x7f1   : > { %2134 = vmatpush1.bf16.msra.mxu0 %v3358_v24  ;;  %v3413_v24 = vld [vmem:[%s4327_s12 + $0x28] sm:$0xff]  }
 0x7f2   : > { %2135 = vmatprep.subr.bf16.mxu0 %v3366_v26  ;;  %v3415_v26 = vld [vmem:[%s4327_s12 + $0x70] sm:$0xff]  }
 0x7f5   : > { %2136 = vmatpush1.bf16.msra.mxu0 %v3364_v28  ;;  %v3417_v28 = vld [vmem:[%s4327_s12 + $0x30] sm:$0xff]  }
 0x7f6   : > { %2137 = vmatprep.subr.bf16.mxu0 %v3372_v30  ;;  %v3419_v30 = vld [vmem:[%s4327_s12 + $0x78] sm:$0xff]  }
 0x7f9   : > { %2138 = vmatpush1.bf16.msra.mxu0 %v3370_v32  ;;  %v3421_v32 = vld [vmem:[%s4327_s12 + $0x38] sm:$0xff]  }
 0x7fa   : > { %2139 = vmatprep.subr.bf16.mxu0 %v3378_v34  ;;  %v1904_v34 = vld [vmem:[%s4313_s2] sm:$0xf] }
 0x7fb   : > { %v1917_v37 = vrot.slane %v1904_v34, %v979_v63  ;;  %v1921_v41 = vrot.slane %v1904_v34, %v1920_v35 }
 0x7fd   : > { %2140 = vmatpush1.bf16.msra.mxu0 %v3376_v36  ;;  %v1909_v36 = vrot.slane %v1904_v34, %v971_v47 }
 0x7fe   : > { %2141 = vmatprep.subr.bf16.mxu0 %v3384_v38  ;;  %v1913_v38 = vrot.slane %v1904_v34, %v975_v49 }
 0x801   : > { %2142 = vmatpush1.bf16.msra.mxu0 %v3382_v42 }
 0x802   : > { %2143 = vmatprep.subr.bf16.mxu0 %v3390_v44 }
 0x805   : > { %2144 = vmatpush1.bf16.msra.mxu0 %v3388_v19 }
 0x806   : > { %3037 = vmatprep.subr.bf16.mxu0 %v3392_v50 }
 0x87b   : > { %v1833_v40 = vpop.xlane.xlu0 %1832 }
 0x87c   : > { %v1837_v12 = vmul.f32 0.0078125, %v1833_v40  ;;  %v3402_v40 = vld [vmem:[%s4327_s12 + $0x90] sm:$0xff]  }
 0x87d   : > { %v1835_v13 = vpop.xlane.xlu1 %1834 }
 0x87e   : > { %v4495_v14 = vsub.f32 %v1828_v3, %v1837_v12  ;;  %v1838_v15 = vmul.f32 0.0078125, %v1835_v13  ;;  %v3393_v3 = vld [vmem:[%s4327_s12] sm:$0xff]   ;;  %v3403_v12 = vld [vmem:[%s4327_s12 + $0x58] sm:$0xff]  }
 0x87f   : > { %v3404_v13 = vld [vmem:[%s4327_s12 + $0xd8] sm:$0xff]  }
 0x880   : > { %v4497_v16 = vsub.f32 %v1829_v18, %v1838_v15  ;;  %v1841_v17 = vmul.f32 %v4495_v14, %v4495_v14  ;;  %v3394_v18 = vld [vmem:[%s4327_s12 + $0x80] sm:$0xff]   ;;  %v3406_v15 = vld [vmem:[%s4327_s12 + $0x98] sm:$0xff]  }
 0x882   : > { %1843 = vadd.xlane.f32.xlu0 %v1841_v17  ;;  %v1842_v20 = vmul.f32 %v4497_v16, %v4497_v16  ;;  %v3408_v17 = vld [vmem:[%s4327_s12 + $0xe0] sm:$0xff]  }
 0x886   : > { %1845 = vadd.xlane.f32.xlu0 %v1842_v20  ;;  %v3409_v20 = vld [vmem:[%s4327_s12 + $0x20] sm:$0xff]  }
 0x90f   : > { %v1844_v51 = vpop.xlane.xlu0 %1843 }
 0x910   : > { %v1847_v52 = vmul.f32 0.0078125, %v1844_v51 }
 0x912   : > { %v1849_v7 = vadd.f32 1e-05, %v1847_v52 }
 0x913   : > { %v1846_v53 = vpop.xlane.xlu0 %1845 }
 0x914   : > { %3455 = vrsqrt.f32 %v1849_v7  ;;  %v1848_v54 = vmul.f32 0.0078125, %v1846_v53 }
 0x916   : > { %v1850_v55 = vadd.f32 1e-05, %v1848_v54 }
 0x918   : > { %3457 = vrsqrt.f32 %v1850_v55 }
 0x91e   : > { %v3456_v56 = vpop.eup %3455 }
 0x91f   : > { %v1853_v57 = vmul.f32 %v3456_v56, %v4495_v14  ;;  %v3405_v14 = vld [vmem:[%s4327_s12 + $0x18] sm:$0xff]  }
 0x921   : > { %v1861_v61 = vmul.f32 %v2902_v58, %v1853_v57 }
 0x922   : > { %v3458_v59 = vpop.eup %3457 }
 0x923   : > { %v1854_v60 = vmul.f32 %v3458_v59, %v4497_v16  ;;  %v4541_v1 = vadd.f32 %v2903_v62, %v1861_v61  ;;  %v3407_v16 = vld [vmem:[%s4327_s12 + $0x60] sm:$0xff]  }
 0x925   : > { %v1862_v0 = vmul.f32 %v2902_v58, %v1854_v60 }
 0x927   : > { %v4543_v2 = vadd.f32 %v2903_v62, %v1862_v0 }
 0x929   : > { %v1871_v4 = vpack.c.bf16 %v4543_v2, %v4541_v1 }
 0x92b   : > { %2119 = vmatmul.mubr.bf16.vlgmr.msra.gmra.mrb[28].mxu1 %v1871_v4  ;;  %2162 = vmatmul.mubr.bf16.vlgmr.msra.gmra.mrb[16].mxu0 %v1871_v4 }
 0x92c   : > { %3016 = vmatpush3.bf16.msra.mxu1 %v3393_v3  ;;  %3038 = vmatpush3.bf16.msra.mxu0 %v3394_v18 }
 0x92d   : > { %3017 = vmatprep.subr.bf16.mxu1 %v3395_v5  ;;  %3039 = vmatprep.subr.bf16.mxu0 %v3396_v6 }
 0x930   : > { %3018 = vmatpush3.bf16.msra.mxu1 %v3397_v8  ;;  %3040 = vmatpush3.bf16.msra.mxu0 %v3398_v9  ;;  %v2936_v8 = vld [vmem:[%s851_s29] ss:$0 sm:$0xff] }
 0x931   : > { %3019 = vmatprep.subr.bf16.mxu1 %v3399_v10  ;;  %3041 = vmatprep.subr.bf16.mxu0 %v3400_v11 }
 0x934   : > { %3020 = vmatpush3.bf16.msra.mxu1 %v3401_v39  ;;  %3042 = vmatpush3.bf16.msra.mxu0 %v3402_v40 }
 0x935   : > { %3021 = vmatprep.subr.bf16.mxu1 %v3403_v12  ;;  %3043 = vmatprep.subr.bf16.mxu0 %v3404_v13 }
 0x938   : > { %3022 = vmatpush3.bf16.msra.mxu1 %v3405_v14  ;;  %3044 = vmatpush3.bf16.msra.mxu0 %v3406_v15 }
 0x939   : > { %3023 = vmatprep.subr.bf16.mxu1 %v3407_v16  ;;  %3045 = vmatprep.subr.bf16.mxu0 %v3408_v17 }
 0x93c   : > { %3024 = vmatpush3.bf16.msra.mxu1 %v3409_v20  ;;  %3046 = vmatpush3.bf16.msra.mxu0 %v3410_v21 }
 0x93d   : > { %3025 = vmatprep.subr.bf16.mxu1 %v3411_v22  ;;  %3047 = vmatprep.subr.bf16.mxu0 %v3412_v23 }
 0x940   : > { %3026 = vmatpush3.bf16.msra.mxu1 %v3413_v24  ;;  %3048 = vmatpush3.bf16.msra.mxu0 %v3414_v25 }
 0x941   : > { %3027 = vmatprep.subr.bf16.mxu1 %v3415_v26  ;;  %3049 = vmatprep.subr.bf16.mxu0 %v3416_v27 }
 0x944   : > { %3028 = vmatpush3.bf16.msra.mxu1 %v3417_v28  ;;  %3050 = vmatpush3.bf16.msra.mxu0 %v3418_v29 }
 0x945   : > { %3029 = vmatprep.subr.bf16.mxu1 %v3419_v30  ;;  %3051 = vmatprep.subr.bf16.mxu0 %v3420_v31 }
 0x948   : > { %3030 = vmatpush3.bf16.msra.mxu1 %v3421_v32  ;;  %3052 = vmatpush3.bf16.msra.mxu0 %v3422_v33 }
 0x9fe   : > { %v2120_v42 = vpop.f32.mrb[28].mxu1  ;;  %v2163_v43 = vpop.f32.mrb[16].mxu0 }
 0x9ff   : > { %v2121_v44 = vadd.f32 %v2120_v42, %v1909_v36  ;;  %v2164_v45 = vadd.f32 %v2163_v43, %v1917_v37  ;;  %v2122_v19 = vpop.f32.mrb[29].mxu1  ;;  %v2165_v48 = vpop.f32.mrb[17].mxu0  ;;  %v2970_v43 = vld [vmem:[%s857_s6] ss:$0 sm:$0xff] }
 0xa00   : > { %v2123_v50 = vadd.f32 %v2122_v19, %v1913_v38  ;;  %v2166_v51 = vadd.f32 %v2165_v48, %v1921_v41  ;;  %v2124_v52 = vpop.f32.mrb[30].mxu1  ;;  %v2167_v7 = vpop.f32.mrb[18].mxu0 }
 0xa01   : > { %v2125_v53 = vadd.f32 %v2124_v52, %v1909_v36  ;;  %v2168_v54 = vadd.f32 %v2167_v7, %v1917_v37  ;;  %v2126_v47 = vpop.f32.mrb[31].mxu1  ;;  %v2169_v55 = vpop.f32.mrb[19].mxu0  ;;  %v2172_v57 = vmax.f32 %v2121_v44, 0.0  ;;  %v2174_v46 = vmax.f32 %v2164_v45, 0.0 }
 0xa02   : > { %v2127_v56 = vadd.f32 %v2126_v47, %v1913_v38  ;;  %v2170_v63 = vadd.f32 %v2169_v55, %v1921_v41  ;;  %v2173_v59 = vmax.f32 %v2123_v50, 0.0  ;;  %v2175_v60 = vmax.f32 %v2166_v51, 0.0  ;;  %v2969_v38 = vld [vmem:[%s854_s0] ss:$0 sm:$0xff] }
 0xa03   : > { %v2176_v49 = vmax.f32 %v2125_v53, 0.0  ;;  %v2178_v58 = vmax.f32 %v2168_v54, 0.0 }
 0xa04   : > { %v2177_v61 = vmax.f32 %v2127_v56, 0.0  ;;  %v2179_v62 = vmax.f32 %v2170_v63, 0.0 }
 0xa05   : > { %v2180_v0 = vpack.c.bf16 %v2176_v49, %v2172_v57  ;;  %v2182_v3 = vpack.c.bf16 %v2178_v58, %v2174_v46 }
 0xa06   : > { %v2181_v18 = vpack.c.bf16 %v2177_v61, %v2173_v59  ;;  %v2183_v4 = vpack.c.bf16 %v2179_v62, %v2175_v60 }
 0xa08   : > { %2479 = vmatprep.mubr.bf16.mxu1 %v2181_v18  ;;  %2520 = vmatprep.mubr.bf16.mxu0 %v2183_v4 }
 0xa09   : > { %2480 = vmatmul.mubr.bf16.vlgmr.msra.gmra.mrb[32].mxu1 %v2180_v0  ;;  %2521 = vmatmul.mubr.bf16.vlgmr.msra.gmra.mrb[20].mxu0 %v2182_v3 }
 0xadc   : > { %v3031_v5 = vpop.f32.mrb[32].mxu1  ;;  %v3053_v6 = vpop.f32.mrb[20].mxu0 }
 0xadd   : > { %v3032_v9 = vpop.f32.mrb[33].mxu1  ;;  %v3054_v10 = vpop.f32.mrb[21].mxu0 }
 0xade   : > { %v3033_v11 = vadd.f32 %v3032_v9, %v3031_v5  ;;  %v3055_v39 = vadd.f32 %v3054_v10, %v3053_v6  ;;  %v3034_v40 = vpop.f32.mrb[34].mxu1  ;;  %v3056_v12 = vpop.f32.mrb[22].mxu0 }
 0xadf   : > { %v3035_v13 = vpop.f32.mrb[35].mxu1  ;;  %v3057_v14 = vpop.f32.mrb[23].mxu0 }
 0xae0   : > { %v2482_v15 = vadd.f32 %v3033_v11, %v2936_v8  ;;  %v3036_v16 = vadd.f32 %v3035_v13, %v3034_v40  ;;  %v3058_v17 = vadd.f32 %v3057_v14, %v3056_v12 }
 0xae2   : > { %v2523_v20 = vadd.f32 %v3055_v39, %v2482_v15  ;;  %v2485_v21 = vadd.f32 %v3036_v16, %v2936_v8 }
 0xae4   : > { %v2526_v22 = vadd.f32 %v3058_v17, %v2485_v21  ;;  %v2529_v23 = vadd.f32 %v2523_v20, %v4541_v1 }
 0xae6   : > { %2533 = vadd.xlane.f32.xlu1 %v2529_v23  ;;  %v2530_v24 = vadd.f32 %v2526_v22, %v4543_v2 }
 0xae8   : > { %2535 = vadd.xlane.f32.xlu0 %v2530_v24 }
 0xb73   : > { %v2534_v25 = vpop.xlane.xlu1 %2533 }
 0xb74   : > { %v2537_v26 = vmul.f32 0.0078125, %v2534_v25 }
 0xb75   : > { %v2536_v27 = vpop.xlane.xlu0 %2535 }
 0xb76   : > { %v2539_v28 = vsub.f32 %v2529_v23, %v2537_v26  ;;  %v2538_v29 = vmul.f32 0.0078125, %v2536_v27 }
 0xb78   : > { %v2540_v30 = vsub.f32 %v2530_v24, %v2538_v29  ;;  %v2541_v31 = vmul.f32 %v2539_v28, %v2539_v28 }
 0xb7a   : > { %2543 = vadd.xlane.f32.xlu1 %v2541_v31  ;;  %v2542_v32 = vmul.f32 %v2540_v30, %v2540_v30 }
 0xb7c   : > { %2545 = vadd.xlane.f32.xlu0 %v2542_v32 }
 0xc07   : > { %v2544_v33 = vpop.xlane.xlu1 %2543 }
 0xc08   : > { %v2547_v34 = vmul.f32 0.0078125, %v2544_v33 }
 0xc09   : > { %v2546_v35 = vpop.xlane.xlu0 %2545 }
 0xc0a   : > { %v2549_v1 = vadd.f32 1e-05, %v2547_v34  ;;  %v2548_v36 = vmul.f32 0.0078125, %v2546_v35 }
 0xc0c   : > { %3459 = vrsqrt.f32 %v2549_v1  ;;  %v2550_v2 = vadd.f32 1e-05, %v2548_v36 }
 0xc0e   : > { %3461 = vrsqrt.f32 %v2550_v2 }
 0xc16   : > { %v3460_v37 = vpop.eup %3459 }
 0xc17   : > { %v2553_v41 = vmul.f32 %v3460_v37, %v2539_v28 }
 0xc18   : > { %v3462_v42 = vpop.eup %3461 }
 0xc19   : > { %v2561_v44 = vmul.f32 %v2969_v38, %v2553_v41  ;;  %v2554_v45 = vmul.f32 %v3462_v42, %v2540_v30  ;;  %2576 = sbr.rel (%p2971_p11) target bundleno = 3104 (0xc20), region = 132 }
 0xc1b   : > { %v2569_v19 = vadd.f32 %v2970_v43, %v2561_v44  ;;  %v2562_v48 = vmul.f32 %v2969_v38, %v2554_v45 }
 0xc1d   : > { %2571 = vst [vmem:[#allocation2] sm:$0xff] %v2569_v19  ;;  %v2570_v50 = vadd.f32 %v2970_v43, %v2562_v48  ;;  %2577 = vst [vmem:[#allocation18] sm:$0xff] (!%p2971_p11), %v2569_v19 }
 0xc1f   : > { %2572 = vst [vmem:[#allocation2 + $0x8] sm:$0xff] %v2570_v50  ;;  %2578 = vst [vmem:[#allocation18 + $0x8] sm:$0xff] (!%p2971_p11), %v2570_v50 }
 0xc20 PF: > { %s4763_s0 = sld [smem:[#allocation27_spill]]  ;;  %s3830_s12 = smov [#allocation18]  }
 0xc21   : > { %s2585_s1 = sshll.u32 %s3830_s12, 4  ;;  %s2586_s1 = int_to_ptr.vmem [resolvable:$true] %s2585_s1 }
 0xc22   : > { %s3723_s23 = scalar_lea.vmem %s2586_s1, 256  ;;  %p3730_p5 = scmp.lt.s32.totalorder %s2586_s1, %s2586_s1 }
 0xc23   : > { %p3724_p3 = scmp.ne.s32.totalorder %s2586_s1, %s3723_s23  ;;  %p3731_p6 = scmp.lt.s32.totalorder %s3723_s23, %s3723_s23 }
 0xc25   : > { %p3732_p8 = por %p3731_p6, %p3730_p5 }
 0xc26   : > { %p3229_p0 = scmp.eq.s32.totalorder %s4763_s0, 1 }
 0xc28   : > { %p3725_p4 = pnand %p3724_p3, %p3229_p0 }
 0xc2a   : > { %p3726_p2 = pneg %p3725_p4 }
 0xc2c   : > { %p3733_p1 = pnand %p3732_p8, %p3726_p2 }
 0xc2e   : > { %3736 = shalt.err (!%p3733_p1)
}
 0xc2f   : > { %s4764_s24 = sld [smem:[#allocation47_spill]] }
 0xc35   : > { %s4765_s5 = smov %s4764_s24  ;;  %s3737_s18 = scalar_lea.hbm %s4764_s24, 256 }
 0xc36   : > { %p3738_p7 = scmp.ne.s32.totalorder %s4765_s5, %s3737_s18  ;;  %p3743_p13 = scmp.lt.u32.totalorder %s3737_s18, %s4765_s5 }
 0xc38   : > { %p3739_p10 = pnand %p3738_p7, %p3229_p0 }
 0xc3a   : > { %p3740_p9 = pneg %p3739_p10 }
 0xc3c   : > { %p3745_p12 = pnand %p3743_p13, %p3740_p9 }
 0xc3e   : > { %3748 = shalt.err (!%p3745_p12)
}
 0xc3f   : > { %s3831_s15 = smov 128   ;;  %s3832_s21 = smov 8  }
 0xc40   : > { %3186 = dma.vmem_to_hbm [thread:$0]  (%p3229_p0), %s2586_s1, 256, %s4765_s5, [#allocation5], %s3831_s15, %s3831_s15, %s3832_s21  }
 0xc41   : > { %3786 = dma.done.wait (%p3229_p0), [#allocation5], 256  }
 0xc42   : > { %3788 = vsyncadd (%p3229_p0), [#allocation5], 4294967040 }
 0xc43 PF: > { %s4766_s27 = sld [smem:[#allocation29_spill]]  ;;  %s4767_s24 = sld [smem:[#allocation25_spill]] }
 0xc44   : > { %s4768_s25 = sld [smem:[#allocation26_spill]]  ;;  %s4769_s26 = sld [smem:[#allocation30_spill]] }
 0xc49   : > { %p34_p11 = scmp.ge.s32.totalorder %s4766_s27, 4  }
 0xc4b   :  { %36 = sbr.rel (!%p34_p11) target bundleno = 25 (0x19), region = 213 }
 0xc52   :  { %2601 = vsyncpa [#allocation4], 1 }
 0xc53   :  { %2603 = vsyncpa [#allocation4 + $0x1], 1 }
 0xc54   :  { %2604 = vsyncpa [#allocation7], 1 }
 0xc55   :  { %2605 = vsyncpa [#allocation10], 1 }
 0xc56   :  { %2606 = vsyncpa [#allocation13], 1 }
 0xc57   :  { %2608 = vsyncpa [#allocation13 + $0x1], 1 }
 0xc58   :  { %2609 = vsyncpa [#allocation16], 1 }
 0xc59   :  { %2611 = vsyncpa [#allocation16 + $0x1], 1 }
 0xc5a   :  { %2612 = vsyncpa [#allocation5], 1 }
 0xc5b   :  { %2614 = vsyncpa [#allocation5 + $0x1], 1 }

</bundles_post_ra>
